<compile_context>
chip_gen: v7x
topology: tpu7x:2x2x1
jax: 0.10.0
libtpu: 0.0.40
codegen_flags: <defaults>
</compile_context>

<pallas_src>
import math

import jax
import jax.numpy as jnp
from jax.experimental import pallas as pl
from jax.experimental.pallas import tpu as pltpu


def _fused_mlp_kernel(x_ref, wi_ref, bi_ref, wh_hbm, bh_ref, wo_hbm, bo_ref,
                      o_ref, whbuf_ref, wobuf_ref, sem_ref):
    """Whole MLP forward in one kernel invocation.

    x_ref   : (B, Din)       f32   VMEM  input activations
    wi_ref  : (Din, D)       bf16  VMEM  input layer weight, (in, out) layout
    bi_ref  : (1, D)         f32   VMEM
    wh_hbm  : (Lh, D, D)     bf16  HBM   stacked hidden-layer weights (manual DMA)
    bh_ref  : (Lh, 1, D)     f32   VMEM
    wo_hbm  : (D, Dout_pad)  bf16  HBM   output weight (manual DMA)
    bo_ref  : (1, Dout_pad)  f32   VMEM
    o_ref   : (B, Dout_pad)  f32   VMEM  output
    whbuf_ref: (2, D, D)     bf16  VMEM  double buffer for hidden weights
    wobuf_ref: (D, Dout_pad) bf16  VMEM  buffer for output weight
    sem_ref : (3,) DMA semaphores  [slot0, slot1, w_out]
    """
    n_hidden = bh_ref.shape[0]

    # Kick off the weight DMAs that are not needed immediately so they overlap
    # with the input-layer / hidden-layer compute.
    wo_copy = pltpu.make_async_copy(wo_hbm, wobuf_ref, sem_ref.at[2])
    wo_copy.start()
    pltpu.make_async_copy(wh_hbm.at[0], whbuf_ref.at[0], sem_ref.at[0]).start()

    # Input layer + ReLU. Activation stays in vregs from here on (no VMEM
    # store->load on the serial layer dependency chain).
    h = jnp.dot(x_ref[...].astype(jnp.bfloat16), wi_ref[...],
                preferred_element_type=jnp.float32)
    h = jnp.maximum(h + bi_ref[...], 0.0)

    # Hidden layers with double-buffered weight DMA (slot = l % 2).
    # Static Python loop: n_hidden is tiny (6) and the only live value across
    # iterations is the (B, D) activation (~2 vregs), so live-range growth is
    # a non-issue; static slot indices keep all DMA addressing static.
    for l in range(n_hidden):
        slot = l & 1
        # Wait for this layer's weights (started at kernel entry for l == 0,
        # otherwise prefetched during the previous iteration).
        pltpu.make_async_copy(wh_hbm.at[l], whbuf_ref.at[slot],
                              sem_ref.at[slot]).wait()
        # Prefetch next layer's weights into the other slot.
        if l + 1 < n_hidden:
            pltpu.make_async_copy(wh_hbm.at[l + 1], whbuf_ref.at[1 - slot],
                                  sem_ref.at[1 - slot]).start()
        y = jnp.dot(h.astype(jnp.bfloat16), whbuf_ref[slot],
                    preferred_element_type=jnp.float32)
        h = jnp.maximum(y + bh_ref[l], 0.0)

    # Output layer (no ReLU); lane-dense (multiple-of-128) store.
    wo_copy.wait()
    y = jnp.dot(h.astype(jnp.bfloat16), wobuf_ref[...],
                preferred_element_type=jnp.float32)
    o_ref[...] = (y + bo_ref[...]).astype(o_ref.dtype)


def _round_up(n, m):
    return ((n + m - 1) // m) * m


def init_mlp_params(key,
                    input_dimension=256,
                    hidden_dimension=256,
                    output_dimension=784,
                    num_hidden_layers=6,
                    weight_dtype=jnp.bfloat16):
    """PyTorch-Linear-style init: U(-1/sqrt(fan_in), 1/sqrt(fan_in)).

    Weights are stored transposed to (in, out) and cast to `weight_dtype`;
    biases stay f32. The output layer is zero-padded along its output dim to a
    multiple of 128 (padded columns/bias are zero and sliced off later).
    """
    assert num_hidden_layers >= 1

    def linear_init(k, fan_in, fan_out):
        kw, kb = jax.random.split(k)
        bound = 1.0 / math.sqrt(fan_in)
        w = jax.random.uniform(kw, (fan_out, fan_in), jnp.float32, -bound, bound)
        b = jax.random.uniform(kb, (fan_out,), jnp.float32, -bound, bound)
        return w.T, b  # (in, out), (out,)

    keys = jax.random.split(key, num_hidden_layers + 2)

    w_in, b_in = linear_init(keys[0], input_dimension, hidden_dimension)
    hw, hb = [], []
    for i in range(num_hidden_layers):
        w, b = linear_init(keys[1 + i], hidden_dimension, hidden_dimension)
        hw.append(w)
        hb.append(b)
    w_out, b_out = linear_init(keys[-1], hidden_dimension, output_dimension)

    out_pad = _round_up(output_dimension, 128)
    w_out_p = jnp.zeros((hidden_dimension, out_pad), jnp.float32)
    w_out_p = w_out_p.at[:, :output_dimension].set(w_out)
    b_out_p = jnp.zeros((out_pad,), jnp.float32).at[:output_dimension].set(b_out)

    return {
        "w_in": w_in.astype(weight_dtype),
        "b_in": b_in.reshape(1, hidden_dimension),
        "w_hidden": jnp.stack(hw).astype(weight_dtype),
        "b_hidden": jnp.stack(hb).reshape(num_hidden_layers, 1, hidden_dimension),
        "w_out": w_out_p.astype(weight_dtype),
        "b_out": b_out_p.reshape(1, out_pad),
    }


def mlp_forward(x, params, output_dimension):
    """Fused forward: single pallas_call, then slice off output padding."""
    B, Din = x.shape
    D = params["w_in"].shape[1]
    Lh = params["w_hidden"].shape[0]
    Dout_pad = params["w_out"].shape[1]

    out_padded = pl.pallas_call(
        _fused_mlp_kernel,
        out_shape=jax.ShapeDtypeStruct((B, Dout_pad), jnp.float32),
        in_specs=[
            pl.BlockSpec((B, Din), lambda: (0, 0)),          # x
            pl.BlockSpec((Din, D), lambda: (0, 0)),          # w_in
            pl.BlockSpec((1, D), lambda: (0, 0)),            # b_in
            pl.BlockSpec(memory_space=pl.ANY),               # w_hidden (HBM, manual DMA)
            pl.BlockSpec((Lh, 1, D), lambda: (0, 0, 0)),     # b_hidden
            pl.BlockSpec(memory_space=pl.ANY),               # w_out (HBM, manual DMA)
            pl.BlockSpec((1, Dout_pad), lambda: (0, 0)),     # b_out
        ],
        out_specs=pl.BlockSpec((B, Dout_pad), lambda: (0, 0)),
        scratch_shapes=[
            pltpu.VMEM((2, D, D), params["w_hidden"].dtype),      # wh double buffer
            pltpu.VMEM((D, Dout_pad), params["w_out"].dtype),     # w_out buffer
            pltpu.SemaphoreType.DMA((3,)),                        # [slot0, slot1, w_out]
        ],
        compiler_params=pltpu.CompilerParams(
            # Real footprint: ~0.7 MiB manual weight buffers + ~0.2 MiB
            # auto-pipelined inputs/outputs; 8 MiB leaves generous headroom on
            # v5e/v6e/v7x without hogging VMEM.
            vmem_limit_bytes=8 << 20,
        ),
    )(x, params["w_in"], params["b_in"],
      params["w_hidden"], params["b_hidden"],
      params["w_out"], params["b_out"])

    return out_padded[:, :output_dimension]


def mlp_reference(x, params, output_dimension):
    """Pure-JAX reference mirroring the kernel numerics (bf16 inputs, f32 acc)."""
    def lin(h, w, b):
        return jnp.dot(h.astype(jnp.bfloat16), w,
                       preferred_element_type=jnp.float32) + b

    h = jnp.maximum(lin(x, params["w_in"], params["b_in"]), 0.0)
    for l in range(params["w_hidden"].shape[0]):
        h = jnp.maximum(lin(h, params["w_hidden"][l], params["b_hidden"][l]), 0.0)
    y = lin(h, params["w_out"], params["b_out"])
    return y[:, :output_dimension]


if __name__ == "__main__":
    key = jax.random.PRNGKey(0)
    key, kx = jax.random.split(key)

    batch = 8
    input_dimension = 256
    hidden_dimension = 256
    output_dimension = 784
    num_hidden_layers = 6

    x = jax.random.normal(kx, (batch, input_dimension), jnp.float32)
    params = init_mlp_params(key, input_dimension, hidden_dimension,
                             output_dimension, num_hidden_layers)

    out = jax.block_until_ready(mlp_forward(x, params, output_dimension))
    ref = jax.block_until_ready(mlp_reference(x, params, output_dimension))

    assert out.shape == (batch, output_dimension), out.shape
    assert jnp.allclose(out, ref, atol=2e-3, rtol=2e-3), "mismatch vs reference"
    print("KERNEL_OK")
</pallas_src>

<mosaic_0001>
module attributes {stable_mosaic.version = 11 : i64} {
  func.func @_fused_mlp_kernel(%arg0: memref<8x256xf32, #tpu.memory_space<vmem>>, %arg1: memref<256x256xbf16, #tpu.memory_space<vmem>>, %arg2: memref<1x256xf32, #tpu.memory_space<vmem>>, %arg3: memref<6x256x256xbf16, #tpu.memory_space<any>>, %arg4: memref<6x1x256xf32, #tpu.memory_space<vmem>>, %arg5: memref<256x896xbf16, #tpu.memory_space<any>>, %arg6: memref<1x896xf32, #tpu.memory_space<vmem>>, %arg7: memref<8x896xf32, #tpu.memory_space<vmem>>, %arg8: memref<2x256x256xbf16, #tpu.memory_space<vmem>>, %arg9: memref<256x896xbf16, #tpu.memory_space<vmem>>, %arg10: memref<3x!tpu.dma_semaphore, #tpu.memory_space<semaphore_mem>>) attributes {dimension_semantics = [], scalar_prefetch = 0 : i64, scratch_operands = 3 : i64, tpu.core_type = #tpu.core_type<tc>} {
    %c2_i32 = arith.constant 2 : i32
    %0 = tpu.memref_slice %arg10[%c2_i32] : memref<3x!tpu.dma_semaphore, #tpu.memory_space<semaphore_mem>> -> memref<1x!tpu.dma_semaphore, #tpu.memory_space<semaphore_mem>>
    %1 = tpu.memref_squeeze %0 : memref<1x!tpu.dma_semaphore, #tpu.memory_space<semaphore_mem>> -> memref<!tpu.dma_semaphore, #tpu.memory_space<semaphore_mem>>
    tpu.enqueue_dma source(%arg5 : memref<256x896xbf16, #tpu.memory_space<any>>) target(%arg9 : memref<256x896xbf16, #tpu.memory_space<vmem>>) target_semaphore(%1 : memref<!tpu.dma_semaphore, #tpu.memory_space<semaphore_mem>>)
    %c0_i32 = arith.constant 0 : i32
    %c0_i32_0 = arith.constant 0 : i32
    %c0_i32_1 = arith.constant 0 : i32
    %c0_i32_2 = arith.constant 0 : i32
    %c0_i32_3 = arith.constant 0 : i32
    %2 = tpu.memref_slice %arg3[%c0_i32, %c0_i32_2, %c0_i32_3] : memref<6x256x256xbf16, #tpu.memory_space<any>> -> memref<1x256x256xbf16, #tpu.memory_space<any>>
    %3 = tpu.memref_squeeze %2 : memref<1x256x256xbf16, #tpu.memory_space<any>> -> memref<256x256xbf16, #tpu.memory_space<any>>
    %c0_i32_4 = arith.constant 0 : i32
    %c0_i32_5 = arith.constant 0 : i32
    %4 = tpu.memref_slice %arg8[%c0_i32_0, %c0_i32_4, %c0_i32_5] : memref<2x256x256xbf16, #tpu.memory_space<vmem>> -> memref<1x256x256xbf16, #tpu.memory_space<vmem>>
    %5 = tpu.memref_squeeze %4 : memref<1x256x256xbf16, #tpu.memory_space<vmem>> -> memref<256x256xbf16, #tpu.memory_space<vmem>>
    %6 = tpu.memref_slice %arg10[%c0_i32_1] : memref<3x!tpu.dma_semaphore, #tpu.memory_space<semaphore_mem>> -> memref<1x!tpu.dma_semaphore, #tpu.memory_space<semaphore_mem>>
    %7 = tpu.memref_squeeze %6 : memref<1x!tpu.dma_semaphore, #tpu.memory_space<semaphore_mem>> -> memref<!tpu.dma_semaphore, #tpu.memory_space<semaphore_mem>>
    tpu.enqueue_dma source(%3 : memref<256x256xbf16, #tpu.memory_space<any>>) target(%5 : memref<256x256xbf16, #tpu.memory_space<vmem>>) target_semaphore(%7 : memref<!tpu.dma_semaphore, #tpu.memory_space<semaphore_mem>>)
    %c0 = arith.constant 0 : index
    %c0_6 = arith.constant 0 : index
    %8 = vector.load %arg0[%c0, %c0_6] : memref<8x256xf32, #tpu.memory_space<vmem>>, vector<8x256xf32>
    %9 = arith.truncf %8 : vector<8x256xf32> to vector<8x256xbf16>
    %c0_7 = arith.constant 0 : index
    %c0_8 = arith.constant 0 : index
    %10 = vector.load %arg1[%c0_7, %c0_8] : memref<256x256xbf16, #tpu.memory_space<vmem>>, vector<256x256xbf16>
    %cst = arith.constant dense<0.000000e+00> : vector<8x256xf32>
    %11 = tpu.matmul %9, %10, %cst {dimension_numbers = #tpu.dot_dimension_numbers<[1], [0], [0], [1], [0, 0, 1, 1], [], []>} : vector<8x256xbf16>, vector<256x256xbf16>, vector<8x256xf32> -> vector<8x256xf32>
    %c0_9 = arith.constant 0 : index
    %c0_10 = arith.constant 0 : index
    %12 = vector.load %arg2[%c0_9, %c0_10] : memref<1x256xf32, #tpu.memory_space<vmem>>, vector<1x256xf32>
    %13 = vector.broadcast %12 : vector<1x256xf32> to vector<8x256xf32>
    %14 = arith.addf %11, %13 : vector<8x256xf32>
    %cst_11 = arith.constant 0.000000e+00 : f32
    %15 = vector.broadcast %cst_11 : f32 to vector<8x256xf32>
    %16 = arith.maximumf %14, %15 : vector<8x256xf32>
    %c0_i32_12 = arith.constant 0 : i32
    %c0_i32_13 = arith.constant 0 : i32
    %c0_i32_14 = arith.constant 0 : i32
    %c0_i32_15 = arith.constant 0 : i32
    %c0_i32_16 = arith.constant 0 : i32
    %17 = tpu.memref_slice %arg3[%c0_i32_12, %c0_i32_15, %c0_i32_16] : memref<6x256x256xbf16, #tpu.memory_space<any>> -> memref<1x256x256xbf16, #tpu.memory_space<any>>
    %18 = tpu.memref_squeeze %17 : memref<1x256x256xbf16, #tpu.memory_space<any>> -> memref<256x256xbf16, #tpu.memory_space<any>>
    %c0_i32_17 = arith.constant 0 : i32
    %c0_i32_18 = arith.constant 0 : i32
    %19 = tpu.memref_slice %arg8[%c0_i32_13, %c0_i32_17, %c0_i32_18] : memref<2x256x256xbf16, #tpu.memory_space<vmem>> -> memref<1x256x256xbf16, #tpu.memory_space<vmem>>
    %20 = tpu.memref_squeeze %19 : memref<1x256x256xbf16, #tpu.memory_space<vmem>> -> memref<256x256xbf16, #tpu.memory_space<vmem>>
    %21 = tpu.memref_slice %arg10[%c0_i32_14] : memref<3x!tpu.dma_semaphore, #tpu.memory_space<semaphore_mem>> -> memref<1x!tpu.dma_semaphore, #tpu.memory_space<semaphore_mem>>
    %22 = tpu.memref_squeeze %21 : memref<1x!tpu.dma_semaphore, #tpu.memory_space<semaphore_mem>> -> memref<!tpu.dma_semaphore, #tpu.memory_space<semaphore_mem>>
    tpu.wait_dma2 semaphore(%22 : memref<!tpu.dma_semaphore, #tpu.memory_space<semaphore_mem>>) src(%18 : memref<256x256xbf16, #tpu.memory_space<any>>) dst(%20 : memref<256x256xbf16, #tpu.memory_space<vmem>>)
    %c1_i32 = arith.constant 1 : i32
    %c1_i32_19 = arith.constant 1 : i32
    %c1_i32_20 = arith.constant 1 : i32
    %c0_i32_21 = arith.constant 0 : i32
    %c0_i32_22 = arith.constant 0 : i32
    %23 = tpu.memref_slice %arg3[%c1_i32, %c0_i32_21, %c0_i32_22] : memref<6x256x256xbf16, #tpu.memory_space<any>> -> memref<1x256x256xbf16, #tpu.memory_space<any>>
    %24 = tpu.memref_squeeze %23 : memref<1x256x256xbf16, #tpu.memory_space<any>> -> memref<256x256xbf16, #tpu.memory_space<any>>
    %c0_i32_23 = arith.constant 0 : i32
    %c0_i32_24 = arith.constant 0 : i32
    %25 = tpu.memref_slice %arg8[%c1_i32_19, %c0_i32_23, %c0_i32_24] : memref<2x256x256xbf16, #tpu.memory_space<vmem>> -> memref<1x256x256xbf16, #tpu.memory_space<vmem>>
    %26 = tpu.memref_squeeze %25 : memref<1x256x256xbf16, #tpu.memory_space<vmem>> -> memref<256x256xbf16, #tpu.memory_space<vmem>>
    %27 = tpu.memref_slice %arg10[%c1_i32_20] : memref<3x!tpu.dma_semaphore, #tpu.memory_space<semaphore_mem>> -> memref<1x!tpu.dma_semaphore, #tpu.memory_space<semaphore_mem>>
    %28 = tpu.memref_squeeze %27 : memref<1x!tpu.dma_semaphore, #tpu.memory_space<semaphore_mem>> -> memref<!tpu.dma_semaphore, #tpu.memory_space<semaphore_mem>>
    tpu.enqueue_dma source(%24 : memref<256x256xbf16, #tpu.memory_space<any>>) target(%26 : memref<256x256xbf16, #tpu.memory_space<vmem>>) target_semaphore(%28 : memref<!tpu.dma_semaphore, #tpu.memory_space<semaphore_mem>>)
    %29 = arith.truncf %16 : vector<8x256xf32> to vector<8x256xbf16>
    %c0_25 = arith.constant 0 : index
    %c0_26 = arith.constant 0 : index
    %c0_27 = arith.constant 0 : index
    %30 = vector.load %arg8[%c0_25, %c0_26, %c0_27] : memref<2x256x256xbf16, #tpu.memory_space<vmem>>, vector<1x256x256xbf16>
    %31 = vector.shape_cast %30 : vector<1x256x256xbf16> to vector<256x256xbf16>
    %cst_28 = arith.constant dense<0.000000e+00> : vector<8x256xf32>
    %32 = tpu.matmul %29, %31, %cst_28 {dimension_numbers = #tpu.dot_dimension_numbers<[1], [0], [0], [1], [0, 0, 1, 1], [], []>} : vector<8x256xbf16>, vector<256x256xbf16>, vector<8x256xf32> -> vector<8x256xf32>
    %c0_29 = arith.constant 0 : index
    %c0_30 = arith.constant 0 : index
    %c0_31 = arith.constant 0 : index
    %33 = vector.load %arg4[%c0_29, %c0_30, %c0_31] : memref<6x1x256xf32, #tpu.memory_space<vmem>>, vector<1x1x256xf32>
    %34 = vector.shape_cast %33 : vector<1x1x256xf32> to vector<1x256xf32>
    %35 = vector.broadcast %34 : vector<1x256xf32> to vector<8x256xf32>
    %36 = arith.addf %32, %35 : vector<8x256xf32>
    %cst_32 = arith.constant 0.000000e+00 : f32
    %37 = vector.broadcast %cst_32 : f32 to vector<8x256xf32>
    %38 = arith.maximumf %36, %37 : vector<8x256xf32>
    %c1_i32_33 = arith.constant 1 : i32
    %c1_i32_34 = arith.constant 1 : i32
    %c1_i32_35 = arith.constant 1 : i32
    %c0_i32_36 = arith.constant 0 : i32
    %c0_i32_37 = arith.constant 0 : i32
    %39 = tpu.memref_slice %arg3[%c1_i32_33, %c0_i32_36, %c0_i32_37] : memref<6x256x256xbf16, #tpu.memory_space<any>> -> memref<1x256x256xbf16, #tpu.memory_space<any>>
    %40 = tpu.memref_squeeze %39 : memref<1x256x256xbf16, #tpu.memory_space<any>> -> memref<256x256xbf16, #tpu.memory_space<any>>
    %c0_i32_38 = arith.constant 0 : i32
    %c0_i32_39 = arith.constant 0 : i32
    %41 = tpu.memref_slice %arg8[%c1_i32_34, %c0_i32_38, %c0_i32_39] : memref<2x256x256xbf16, #tpu.memory_space<vmem>> -> memref<1x256x256xbf16, #tpu.memory_space<vmem>>
    %42 = tpu.memref_squeeze %41 : memref<1x256x256xbf16, #tpu.memory_space<vmem>> -> memref<256x256xbf16, #tpu.memory_space<vmem>>
    %43 = tpu.memref_slice %arg10[%c1_i32_35] : memref<3x!tpu.dma_semaphore, #tpu.memory_space<semaphore_mem>> -> memref<1x!tpu.dma_semaphore, #tpu.memory_space<semaphore_mem>>
    %44 = tpu.memref_squeeze %43 : memref<1x!tpu.dma_semaphore, #tpu.memory_space<semaphore_mem>> -> memref<!tpu.dma_semaphore, #tpu.memory_space<semaphore_mem>>
    tpu.wait_dma2 semaphore(%44 : memref<!tpu.dma_semaphore, #tpu.memory_space<semaphore_mem>>) src(%40 : memref<256x256xbf16, #tpu.memory_space<any>>) dst(%42 : memref<256x256xbf16, #tpu.memory_space<vmem>>)
    %c2_i32_40 = arith.constant 2 : i32
    %c0_i32_41 = arith.constant 0 : i32
    %c0_i32_42 = arith.constant 0 : i32
    %c0_i32_43 = arith.constant 0 : i32
    %c0_i32_44 = arith.constant 0 : i32
    %45 = tpu.memref_slice %arg3[%c2_i32_40, %c0_i32_43, %c0_i32_44] : memref<6x256x256xbf16, #tpu.memory_space<any>> -> memref<1x256x256xbf16, #tpu.memory_space<any>>
    %46 = tpu.memref_squeeze %45 : memref<1x256x256xbf16, #tpu.memory_space<any>> -> memref<256x256xbf16, #tpu.memory_space<any>>
    %c0_i32_45 = arith.constant 0 : i32
    %c0_i32_46 = arith.constant 0 : i32
    %47 = tpu.memref_slice %arg8[%c0_i32_41, %c0_i32_45, %c0_i32_46] : memref<2x256x256xbf16, #tpu.memory_space<vmem>> -> memref<1x256x256xbf16, #tpu.memory_space<vmem>>
    %48 = tpu.memref_squeeze %47 : memref<1x256x256xbf16, #tpu.memory_space<vmem>> -> memref<256x256xbf16, #tpu.memory_space<vmem>>
    %49 = tpu.memref_slice %arg10[%c0_i32_42] : memref<3x!tpu.dma_semaphore, #tpu.memory_space<semaphore_mem>> -> memref<1x!tpu.dma_semaphore, #tpu.memory_space<semaphore_mem>>
    %50 = tpu.memref_squeeze %49 : memref<1x!tpu.dma_semaphore, #tpu.memory_space<semaphore_mem>> -> memref<!tpu.dma_semaphore, #tpu.memory_space<semaphore_mem>>
    tpu.enqueue_dma source(%46 : memref<256x256xbf16, #tpu.memory_space<any>>) target(%48 : memref<256x256xbf16, #tpu.memory_space<vmem>>) target_semaphore(%50 : memref<!tpu.dma_semaphore, #tpu.memory_space<semaphore_mem>>)
    %51 = arith.truncf %38 : vector<8x256xf32> to vector<8x256xbf16>
    %c1 = arith.constant 1 : index
    %c0_47 = arith.constant 0 : index
    %c0_48 = arith.constant 0 : index
    %52 = vector.load %arg8[%c1, %c0_47, %c0_48] : memref<2x256x256xbf16, #tpu.memory_space<vmem>>, vector<1x256x256xbf16>
    %53 = vector.shape_cast %52 : vector<1x256x256xbf16> to vector<256x256xbf16>
    %cst_49 = arith.constant dense<0.000000e+00> : vector<8x256xf32>
    %54 = tpu.matmul %51, %53, %cst_49 {dimension_numbers = #tpu.dot_dimension_numbers<[1], [0], [0], [1], [0, 0, 1, 1], [], []>} : vector<8x256xbf16>, vector<256x256xbf16>, vector<8x256xf32> -> vector<8x256xf32>
    %c1_50 = arith.constant 1 : index
    %c0_51 = arith.constant 0 : index
    %c0_52 = arith.constant 0 : index
    %55 = vector.load %arg4[%c1_50, %c0_51, %c0_52] : memref<6x1x256xf32, #tpu.memory_space<vmem>>, vector<1x1x256xf32>
    %56 = vector.shape_cast %55 : vector<1x1x256xf32> to vector<1x256xf32>
    %57 = vector.broadcast %56 : vector<1x256xf32> to vector<8x256xf32>
    %58 = arith.addf %54, %57 : vector<8x256xf32>
    %cst_53 = arith.constant 0.000000e+00 : f32
    %59 = vector.broadcast %cst_53 : f32 to vector<8x256xf32>
    %60 = arith.maximumf %58, %59 : vector<8x256xf32>
    %c2_i32_54 = arith.constant 2 : i32
    %c0_i32_55 = arith.constant 0 : i32
    %c0_i32_56 = arith.constant 0 : i32
    %c0_i32_57 = arith.constant 0 : i32
    %c0_i32_58 = arith.constant 0 : i32
    %61 = tpu.memref_slice %arg3[%c2_i32_54, %c0_i32_57, %c0_i32_58] : memref<6x256x256xbf16, #tpu.memory_space<any>> -> memref<1x256x256xbf16, #tpu.memory_space<any>>
    %62 = tpu.memref_squeeze %61 : memref<1x256x256xbf16, #tpu.memory_space<any>> -> memref<256x256xbf16, #tpu.memory_space<any>>
    %c0_i32_59 = arith.constant 0 : i32
    %c0_i32_60 = arith.constant 0 : i32
    %63 = tpu.memref_slice %arg8[%c0_i32_55, %c0_i32_59, %c0_i32_60] : memref<2x256x256xbf16, #tpu.memory_space<vmem>> -> memref<1x256x256xbf16, #tpu.memory_space<vmem>>
    %64 = tpu.memref_squeeze %63 : memref<1x256x256xbf16, #tpu.memory_space<vmem>> -> memref<256x256xbf16, #tpu.memory_space<vmem>>
    %65 = tpu.memref_slice %arg10[%c0_i32_56] : memref<3x!tpu.dma_semaphore, #tpu.memory_space<semaphore_mem>> -> memref<1x!tpu.dma_semaphore, #tpu.memory_space<semaphore_mem>>
    %66 = tpu.memref_squeeze %65 : memref<1x!tpu.dma_semaphore, #tpu.memory_space<semaphore_mem>> -> memref<!tpu.dma_semaphore, #tpu.memory_space<semaphore_mem>>
    tpu.wait_dma2 semaphore(%66 : memref<!tpu.dma_semaphore, #tpu.memory_space<semaphore_mem>>) src(%62 : memref<256x256xbf16, #tpu.memory_space<any>>) dst(%64 : memref<256x256xbf16, #tpu.memory_space<vmem>>)
    %c3_i32 = arith.constant 3 : i32
    %c1_i32_61 = arith.constant 1 : i32
    %c1_i32_62 = arith.constant 1 : i32
    %c0_i32_63 = arith.constant 0 : i32
    %c0_i32_64 = arith.constant 0 : i32
    %67 = tpu.memref_slice %arg3[%c3_i32, %c0_i32_63, %c0_i32_64] : memref<6x256x256xbf16, #tpu.memory_space<any>> -> memref<1x256x256xbf16, #tpu.memory_space<any>>
    %68 = tpu.memref_squeeze %67 : memref<1x256x256xbf16, #tpu.memory_space<any>> -> memref<256x256xbf16, #tpu.memory_space<any>>
    %c0_i32_65 = arith.constant 0 : i32
    %c0_i32_66 = arith.constant 0 : i32
    %69 = tpu.memref_slice %arg8[%c1_i32_61, %c0_i32_65, %c0_i32_66] : memref<2x256x256xbf16, #tpu.memory_space<vmem>> -> memref<1x256x256xbf16, #tpu.memory_space<vmem>>
    %70 = tpu.memref_squeeze %69 : memref<1x256x256xbf16, #tpu.memory_space<vmem>> -> memref<256x256xbf16, #tpu.memory_space<vmem>>
    %71 = tpu.memref_slice %arg10[%c1_i32_62] : memref<3x!tpu.dma_semaphore, #tpu.memory_space<semaphore_mem>> -> memref<1x!tpu.dma_semaphore, #tpu.memory_space<semaphore_mem>>
    %72 = tpu.memref_squeeze %71 : memref<1x!tpu.dma_semaphore, #tpu.memory_space<semaphore_mem>> -> memref<!tpu.dma_semaphore, #tpu.memory_space<semaphore_mem>>
    tpu.enqueue_dma source(%68 : memref<256x256xbf16, #tpu.memory_space<any>>) target(%70 : memref<256x256xbf16, #tpu.memory_space<vmem>>) target_semaphore(%72 : memref<!tpu.dma_semaphore, #tpu.memory_space<semaphore_mem>>)
    %73 = arith.truncf %60 : vector<8x256xf32> to vector<8x256xbf16>
    %c0_67 = arith.constant 0 : index
    %c0_68 = arith.constant 0 : index
    %c0_69 = arith.constant 0 : index
    %74 = vector.load %arg8[%c0_67, %c0_68, %c0_69] : memref<2x256x256xbf16, #tpu.memory_space<vmem>>, vector<1x256x256xbf16>
    %75 = vector.shape_cast %74 : vector<1x256x256xbf16> to vector<256x256xbf16>
    %cst_70 = arith.constant dense<0.000000e+00> : vector<8x256xf32>
    %76 = tpu.matmul %73, %75, %cst_70 {dimension_numbers = #tpu.dot_dimension_numbers<[1], [0], [0], [1], [0, 0, 1, 1], [], []>} : vector<8x256xbf16>, vector<256x256xbf16>, vector<8x256xf32> -> vector<8x256xf32>
    %c2 = arith.constant 2 : index
    %c0_71 = arith.constant 0 : index
    %c0_72 = arith.constant 0 : index
    %77 = vector.load %arg4[%c2, %c0_71, %c0_72] : memref<6x1x256xf32, #tpu.memory_space<vmem>>, vector<1x1x256xf32>
    %78 = vector.shape_cast %77 : vector<1x1x256xf32> to vector<1x256xf32>
    %79 = vector.broadcast %78 : vector<1x256xf32> to vector<8x256xf32>
    %80 = arith.addf %76, %79 : vector<8x256xf32>
    %cst_73 = arith.constant 0.000000e+00 : f32
    %81 = vector.broadcast %cst_73 : f32 to vector<8x256xf32>
    %82 = arith.maximumf %80, %81 : vector<8x256xf32>
    %c3_i32_74 = arith.constant 3 : i32
    %c1_i32_75 = arith.constant 1 : i32
    %c1_i32_76 = arith.constant 1 : i32
    %c0_i32_77 = arith.constant 0 : i32
    %c0_i32_78 = arith.constant 0 : i32
    %83 = tpu.memref_slice %arg3[%c3_i32_74, %c0_i32_77, %c0_i32_78] : memref<6x256x256xbf16, #tpu.memory_space<any>> -> memref<1x256x256xbf16, #tpu.memory_space<any>>
    %84 = tpu.memref_squeeze %83 : memref<1x256x256xbf16, #tpu.memory_space<any>> -> memref<256x256xbf16, #tpu.memory_space<any>>
    %c0_i32_79 = arith.constant 0 : i32
    %c0_i32_80 = arith.constant 0 : i32
    %85 = tpu.memref_slice %arg8[%c1_i32_75, %c0_i32_79, %c0_i32_80] : memref<2x256x256xbf16, #tpu.memory_space<vmem>> -> memref<1x256x256xbf16, #tpu.memory_space<vmem>>
    %86 = tpu.memref_squeeze %85 : memref<1x256x256xbf16, #tpu.memory_space<vmem>> -> memref<256x256xbf16, #tpu.memory_space<vmem>>
    %87 = tpu.memref_slice %arg10[%c1_i32_76] : memref<3x!tpu.dma_semaphore, #tpu.memory_space<semaphore_mem>> -> memref<1x!tpu.dma_semaphore, #tpu.memory_space<semaphore_mem>>
    %88 = tpu.memref_squeeze %87 : memref<1x!tpu.dma_semaphore, #tpu.memory_space<semaphore_mem>> -> memref<!tpu.dma_semaphore, #tpu.memory_space<semaphore_mem>>
    tpu.wait_dma2 semaphore(%88 : memref<!tpu.dma_semaphore, #tpu.memory_space<semaphore_mem>>) src(%84 : memref<256x256xbf16, #tpu.memory_space<any>>) dst(%86 : memref<256x256xbf16, #tpu.memory_space<vmem>>)
    %c4_i32 = arith.constant 4 : i32
    %c0_i32_81 = arith.constant 0 : i32
    %c0_i32_82 = arith.constant 0 : i32
    %c0_i32_83 = arith.constant 0 : i32
    %c0_i32_84 = arith.constant 0 : i32
    %89 = tpu.memref_slice %arg3[%c4_i32, %c0_i32_83, %c0_i32_84] : memref<6x256x256xbf16, #tpu.memory_space<any>> -> memref<1x256x256xbf16, #tpu.memory_space<any>>
    %90 = tpu.memref_squeeze %89 : memref<1x256x256xbf16, #tpu.memory_space<any>> -> memref<256x256xbf16, #tpu.memory_space<any>>
    %c0_i32_85 = arith.constant 0 : i32
    %c0_i32_86 = arith.constant 0 : i32
    %91 = tpu.memref_slice %arg8[%c0_i32_81, %c0_i32_85, %c0_i32_86] : memref<2x256x256xbf16, #tpu.memory_space<vmem>> -> memref<1x256x256xbf16, #tpu.memory_space<vmem>>
    %92 = tpu.memref_squeeze %91 : memref<1x256x256xbf16, #tpu.memory_space<vmem>> -> memref<256x256xbf16, #tpu.memory_space<vmem>>
    %93 = tpu.memref_slice %arg10[%c0_i32_82] : memref<3x!tpu.dma_semaphore, #tpu.memory_space<semaphore_mem>> -> memref<1x!tpu.dma_semaphore, #tpu.memory_space<semaphore_mem>>
    %94 = tpu.memref_squeeze %93 : memref<1x!tpu.dma_semaphore, #tpu.memory_space<semaphore_mem>> -> memref<!tpu.dma_semaphore, #tpu.memory_space<semaphore_mem>>
    tpu.enqueue_dma source(%90 : memref<256x256xbf16, #tpu.memory_space<any>>) target(%92 : memref<256x256xbf16, #tpu.memory_space<vmem>>) target_semaphore(%94 : memref<!tpu.dma_semaphore, #tpu.memory_space<semaphore_mem>>)
    %95 = arith.truncf %82 : vector<8x256xf32> to vector<8x256xbf16>
    %c1_87 = arith.constant 1 : index
    %c0_88 = arith.constant 0 : index
    %c0_89 = arith.constant 0 : index
    %96 = vector.load %arg8[%c1_87, %c0_88, %c0_89] : memref<2x256x256xbf16, #tpu.memory_space<vmem>>, vector<1x256x256xbf16>
    %97 = vector.shape_cast %96 : vector<1x256x256xbf16> to vector<256x256xbf16>
    %cst_90 = arith.constant dense<0.000000e+00> : vector<8x256xf32>
    %98 = tpu.matmul %95, %97, %cst_90 {dimension_numbers = #tpu.dot_dimension_numbers<[1], [0], [0], [1], [0, 0, 1, 1], [], []>} : vector<8x256xbf16>, vector<256x256xbf16>, vector<8x256xf32> -> vector<8x256xf32>
    %c3 = arith.constant 3 : index
    %c0_91 = arith.constant 0 : index
    %c0_92 = arith.constant 0 : index
    %99 = vector.load %arg4[%c3, %c0_91, %c0_92] : memref<6x1x256xf32, #tpu.memory_space<vmem>>, vector<1x1x256xf32>
    %100 = vector.shape_cast %99 : vector<1x1x256xf32> to vector<1x256xf32>
    %101 = vector.broadcast %100 : vector<1x256xf32> to vector<8x256xf32>
    %102 = arith.addf %98, %101 : vector<8x256xf32>
    %cst_93 = arith.constant 0.000000e+00 : f32
    %103 = vector.broadcast %cst_93 : f32 to vector<8x256xf32>
    %104 = arith.maximumf %102, %103 : vector<8x256xf32>
    %c4_i32_94 = arith.constant 4 : i32
    %c0_i32_95 = arith.constant 0 : i32
    %c0_i32_96 = arith.constant 0 : i32
    %c0_i32_97 = arith.constant 0 : i32
    %c0_i32_98 = arith.constant 0 : i32
    %105 = tpu.memref_slice %arg3[%c4_i32_94, %c0_i32_97, %c0_i32_98] : memref<6x256x256xbf16, #tpu.memory_space<any>> -> memref<1x256x256xbf16, #tpu.memory_space<any>>
    %106 = tpu.memref_squeeze %105 : memref<1x256x256xbf16, #tpu.memory_space<any>> -> memref<256x256xbf16, #tpu.memory_space<any>>
    %c0_i32_99 = arith.constant 0 : i32
    %c0_i32_100 = arith.constant 0 : i32
    %107 = tpu.memref_slice %arg8[%c0_i32_95, %c0_i32_99, %c0_i32_100] : memref<2x256x256xbf16, #tpu.memory_space<vmem>> -> memref<1x256x256xbf16, #tpu.memory_space<vmem>>
    %108 = tpu.memref_squeeze %107 : memref<1x256x256xbf16, #tpu.memory_space<vmem>> -> memref<256x256xbf16, #tpu.memory_space<vmem>>
    %109 = tpu.memref_slice %arg10[%c0_i32_96] : memref<3x!tpu.dma_semaphore, #tpu.memory_space<semaphore_mem>> -> memref<1x!tpu.dma_semaphore, #tpu.memory_space<semaphore_mem>>
    %110 = tpu.memref_squeeze %109 : memref<1x!tpu.dma_semaphore, #tpu.memory_space<semaphore_mem>> -> memref<!tpu.dma_semaphore, #tpu.memory_space<semaphore_mem>>
    tpu.wait_dma2 semaphore(%110 : memref<!tpu.dma_semaphore, #tpu.memory_space<semaphore_mem>>) src(%106 : memref<256x256xbf16, #tpu.memory_space<any>>) dst(%108 : memref<256x256xbf16, #tpu.memory_space<vmem>>)
    %c5_i32 = arith.constant 5 : i32
    %c1_i32_101 = arith.constant 1 : i32
    %c1_i32_102 = arith.constant 1 : i32
    %c0_i32_103 = arith.constant 0 : i32
    %c0_i32_104 = arith.constant 0 : i32
    %111 = tpu.memref_slice %arg3[%c5_i32, %c0_i32_103, %c0_i32_104] : memref<6x256x256xbf16, #tpu.memory_space<any>> -> memref<1x256x256xbf16, #tpu.memory_space<any>>
    %112 = tpu.memref_squeeze %111 : memref<1x256x256xbf16, #tpu.memory_space<any>> -> memref<256x256xbf16, #tpu.memory_space<any>>
    %c0_i32_105 = arith.constant 0 : i32
    %c0_i32_106 = arith.constant 0 : i32
    %113 = tpu.memref_slice %arg8[%c1_i32_101, %c0_i32_105, %c0_i32_106] : memref<2x256x256xbf16, #tpu.memory_space<vmem>> -> memref<1x256x256xbf16, #tpu.memory_space<vmem>>
    %114 = tpu.memref_squeeze %113 : memref<1x256x256xbf16, #tpu.memory_space<vmem>> -> memref<256x256xbf16, #tpu.memory_space<vmem>>
    %115 = tpu.memref_slice %arg10[%c1_i32_102] : memref<3x!tpu.dma_semaphore, #tpu.memory_space<semaphore_mem>> -> memref<1x!tpu.dma_semaphore, #tpu.memory_space<semaphore_mem>>
    %116 = tpu.memref_squeeze %115 : memref<1x!tpu.dma_semaphore, #tpu.memory_space<semaphore_mem>> -> memref<!tpu.dma_semaphore, #tpu.memory_space<semaphore_mem>>
    tpu.enqueue_dma source(%112 : memref<256x256xbf16, #tpu.memory_space<any>>) target(%114 : memref<256x256xbf16, #tpu.memory_space<vmem>>) target_semaphore(%116 : memref<!tpu.dma_semaphore, #tpu.memory_space<semaphore_mem>>)
    %117 = arith.truncf %104 : vector<8x256xf32> to vector<8x256xbf16>
    %c0_107 = arith.constant 0 : index
    %c0_108 = arith.constant 0 : index
    %c0_109 = arith.constant 0 : index
    %118 = vector.load %arg8[%c0_107, %c0_108, %c0_109] : memref<2x256x256xbf16, #tpu.memory_space<vmem>>, vector<1x256x256xbf16>
    %119 = vector.shape_cast %118 : vector<1x256x256xbf16> to vector<256x256xbf16>
    %cst_110 = arith.constant dense<0.000000e+00> : vector<8x256xf32>
    %120 = tpu.matmul %117, %119, %cst_110 {dimension_numbers = #tpu.dot_dimension_numbers<[1], [0], [0], [1], [0, 0, 1, 1], [], []>} : vector<8x256xbf16>, vector<256x256xbf16>, vector<8x256xf32> -> vector<8x256xf32>
    %c4 = arith.constant 4 : index
    %c0_111 = arith.constant 0 : index
    %c0_112 = arith.constant 0 : index
    %121 = vector.load %arg4[%c4, %c0_111, %c0_112] : memref<6x1x256xf32, #tpu.memory_space<vmem>>, vector<1x1x256xf32>
    %122 = vector.shape_cast %121 : vector<1x1x256xf32> to vector<1x256xf32>
    %123 = vector.broadcast %122 : vector<1x256xf32> to vector<8x256xf32>
    %124 = arith.addf %120, %123 : vector<8x256xf32>
    %cst_113 = arith.constant 0.000000e+00 : f32
    %125 = vector.broadcast %cst_113 : f32 to vector<8x256xf32>
    %126 = arith.maximumf %124, %125 : vector<8x256xf32>
    %c5_i32_114 = arith.constant 5 : i32
    %c1_i32_115 = arith.constant 1 : i32
    %c1_i32_116 = arith.constant 1 : i32
    %c0_i32_117 = arith.constant 0 : i32
    %c0_i32_118 = arith.constant 0 : i32
    %127 = tpu.memref_slice %arg3[%c5_i32_114, %c0_i32_117, %c0_i32_118] : memref<6x256x256xbf16, #tpu.memory_space<any>> -> memref<1x256x256xbf16, #tpu.memory_space<any>>
    %128 = tpu.memref_squeeze %127 : memref<1x256x256xbf16, #tpu.memory_space<any>> -> memref<256x256xbf16, #tpu.memory_space<any>>
    %c0_i32_119 = arith.constant 0 : i32
    %c0_i32_120 = arith.constant 0 : i32
    %129 = tpu.memref_slice %arg8[%c1_i32_115, %c0_i32_119, %c0_i32_120] : memref<2x256x256xbf16, #tpu.memory_space<vmem>> -> memref<1x256x256xbf16, #tpu.memory_space<vmem>>
    %130 = tpu.memref_squeeze %129 : memref<1x256x256xbf16, #tpu.memory_space<vmem>> -> memref<256x256xbf16, #tpu.memory_space<vmem>>
    %131 = tpu.memref_slice %arg10[%c1_i32_116] : memref<3x!tpu.dma_semaphore, #tpu.memory_space<semaphore_mem>> -> memref<1x!tpu.dma_semaphore, #tpu.memory_space<semaphore_mem>>
    %132 = tpu.memref_squeeze %131 : memref<1x!tpu.dma_semaphore, #tpu.memory_space<semaphore_mem>> -> memref<!tpu.dma_semaphore, #tpu.memory_space<semaphore_mem>>
    tpu.wait_dma2 semaphore(%132 : memref<!tpu.dma_semaphore, #tpu.memory_space<semaphore_mem>>) src(%128 : memref<256x256xbf16, #tpu.memory_space<any>>) dst(%130 : memref<256x256xbf16, #tpu.memory_space<vmem>>)
    %133 = arith.truncf %126 : vector<8x256xf32> to vector<8x256xbf16>
    %c1_121 = arith.constant 1 : index
    %c0_122 = arith.constant 0 : index
    %c0_123 = arith.constant 0 : index
    %134 = vector.load %arg8[%c1_121, %c0_122, %c0_123] : memref<2x256x256xbf16, #tpu.memory_space<vmem>>, vector<1x256x256xbf16>
    %135 = vector.shape_cast %134 : vector<1x256x256xbf16> to vector<256x256xbf16>
    %cst_124 = arith.constant dense<0.000000e+00> : vector<8x256xf32>
    %136 = tpu.matmul %133, %135, %cst_124 {dimension_numbers = #tpu.dot_dimension_numbers<[1], [0], [0], [1], [0, 0, 1, 1], [], []>} : vector<8x256xbf16>, vector<256x256xbf16>, vector<8x256xf32> -> vector<8x256xf32>
    %c5 = arith.constant 5 : index
    %c0_125 = arith.constant 0 : index
    %c0_126 = arith.constant 0 : index
    %137 = vector.load %arg4[%c5, %c0_125, %c0_126] : memref<6x1x256xf32, #tpu.memory_space<vmem>>, vector<1x1x256xf32>
    %138 = vector.shape_cast %137 : vector<1x1x256xf32> to vector<1x256xf32>
    %139 = vector.broadcast %138 : vector<1x256xf32> to vector<8x256xf32>
    %140 = arith.addf %136, %139 : vector<8x256xf32>
    %cst_127 = arith.constant 0.000000e+00 : f32
    %141 = vector.broadcast %cst_127 : f32 to vector<8x256xf32>
    %142 = arith.maximumf %140, %141 : vector<8x256xf32>
    %c2_i32_128 = arith.constant 2 : i32
    %143 = tpu.memref_slice %arg10[%c2_i32_128] : memref<3x!tpu.dma_semaphore, #tpu.memory_space<semaphore_mem>> -> memref<1x!tpu.dma_semaphore, #tpu.memory_space<semaphore_mem>>
    %144 = tpu.memref_squeeze %143 : memref<1x!tpu.dma_semaphore, #tpu.memory_space<semaphore_mem>> -> memref<!tpu.dma_semaphore, #tpu.memory_space<semaphore_mem>>
    tpu.wait_dma2 semaphore(%144 : memref<!tpu.dma_semaphore, #tpu.memory_space<semaphore_mem>>) src(%arg5 : memref<256x896xbf16, #tpu.memory_space<any>>) dst(%arg9 : memref<256x896xbf16, #tpu.memory_space<vmem>>)
    %145 = arith.truncf %142 : vector<8x256xf32> to vector<8x256xbf16>
    %c0_129 = arith.constant 0 : index
    %c0_130 = arith.constant 0 : index
    %146 = vector.load %arg9[%c0_129, %c0_130] : memref<256x896xbf16, #tpu.memory_space<vmem>>, vector<256x896xbf16>
    %cst_131 = arith.constant dense<0.000000e+00> : vector<8x896xf32>
    %147 = tpu.matmul %145, %146, %cst_131 {dimension_numbers = #tpu.dot_dimension_numbers<[1], [0], [0], [1], [0, 0, 1, 1], [], []>} : vector<8x256xbf16>, vector<256x896xbf16>, vector<8x896xf32> -> vector<8x896xf32>
    %c0_132 = arith.constant 0 : index
    %c0_133 = arith.constant 0 : index
    %148 = vector.load %arg6[%c0_132, %c0_133] : memref<1x896xf32, #tpu.memory_space<vmem>>, vector<1x896xf32>
    %149 = vector.broadcast %148 : vector<1x896xf32> to vector<8x896xf32>
    %150 = arith.addf %147, %149 : vector<8x896xf32>
    %c0_134 = arith.constant 0 : index
    %c0_135 = arith.constant 0 : index
    %151 = vector.load %arg7[%c0_134, %c0_135] : memref<8x896xf32, #tpu.memory_space<vmem>>, vector<8x896xf32>
    tpu.vector_store %arg7[%c0_134, %c0_135], %150 {strides = array<i32>} : memref<8x896xf32, #tpu.memory_space<vmem>>, vector<8x896xf32>,
    return
  }
}

</mosaic_0001>

<bundles_post_ra>
// kernel: tpu_custom_call.1
= control target key start
LH: loop header
LB: loop body
LE: loop exit
PB: predicated region body
PF: predicated region fallthrough
CT: control target
= control target key end

     0   :  { %12 = vsyncpa [#allocation6], 0  ;;  %s2018_s0 = inlined_call_operand.hbm [shape: f32[8,256], index: 0, kind: input, shape index: {}]   ;;  %s2019_s1 = inlined_call_operand.hbm [shape: bf16[256,256], index: 1, kind: input, shape index: {}]   ;;  %s2020_s2 = inlined_call_operand.vmem [shape: f32[1,256], index: 2, kind: input, shape index: {}]   ;;  %s2021_s3 = inlined_call_operand.hbm [shape: bf16[6,256,256], index: 3, kind: input, shape index: {}]   ;;  %s2022_s4 = inlined_call_operand.vmem [shape: f32[6,1,256], index: 4, kind: input, shape index: {}]   ;;  %s2023_s5 = inlined_call_operand.hbm [shape: bf16[256,896], index: 5, kind: input, shape index: {}]   ;;  %s2024_s6 = inlined_call_operand.vmem [shape: f32[1,896], index: 6, kind: input, shape index: {}]   ;;  %s2025_s7 = inlined_call_operand.hbm [shape: f32[8,896], index: 7, kind: output, shape index: {}]  }
   0x1   :  { %13 = vsyncpa [#allocation9], 0 }
   0x2   :  { %14 = vsyncpa [#allocation7], 0  ;;  %s1696_s24 = smov [#allocation5]   ;;  %s1697_s26 = smov [#allocation8]  }
   0x3   :  { %s21_s25 = sshll.u32 %s1696_s24, 4  ;;  %s30_s27 = sshll.u32 %s1697_s26, 4  ;;  %s22_s25 = int_to_ptr.vmem [resolvable:$true] %s21_s25  ;;  %s1761_s27 = int_to_ptr.vmem [resolvable:$true] %s30_s27 }
   0x4   :  { %s1610_s30 = scalar_lea.hbm %s2018_s0, 256 }
   0x5   :  { %p1611_p0 = scmp.ne.s32.totalorder %s2018_s0, %s1610_s30  ;;  %p1614_p1 = scmp.lt.u32.totalorder %s1610_s30, %s2018_s0 }
   0x7   :  { %p1616_p2 = pnand %p1614_p1, %p1611_p0 }
   0x9   :  { %1619 = shalt.err (!%p1616_p2)
}
   0xa   :  { %s1620_s12 = scalar_lea.vmem %s22_s25, 256  ;;  %p1625_p4 = scmp.lt.s32.totalorder %s22_s25, %s22_s25 }
   0xb   :  { %p1621_p3 = scmp.ne.s32.totalorder %s22_s25, %s1620_s12  ;;  %p1626_p5 = scmp.lt.s32.totalorder %s1620_s12, %s1620_s12 }
   0xd   :  { %p1627_p6 = por %p1626_p5, %p1625_p4 }
   0xf   :  { %p1628_p7 = pnand %p1627_p6, %p1621_p3 }
  0x11   :  { %1631 = shalt.err (!%p1628_p7)
}
  0x12   :  { %24 = dma.hbm_to_vmem [thread:$0]  %s2018_s0, 256, %s22_s25, [#allocation6]  }
  0x13   :  { %s1632_s17 = scalar_lea.hbm %s2019_s1, 4096 }
  0x14   :  { %p1633_p8 = scmp.ne.s32.totalorder %s2019_s1, %s1632_s17  ;;  %p1636_p9 = scmp.lt.u32.totalorder %s1632_s17, %s2019_s1 }
  0x16   :  { %p1638_p10 = pnand %p1636_p9, %p1633_p8 }
  0x18   :  { %1641 = shalt.err (!%p1638_p10)
}
  0x19   :  { %s1642_s22 = scalar_lea.vmem %s1761_s27, 4096  ;;  %p1647_p12 = scmp.lt.s32.totalorder %s1761_s27, %s1761_s27 }
  0x1a   :  { %p1643_p11 = scmp.ne.s32.totalorder %s1761_s27, %s1642_s22  ;;  %p1648_p13 = scmp.lt.s32.totalorder %s1642_s22, %s1642_s22 }
  0x1c   :  { %p1649_p0 = por %p1648_p13, %p1647_p12 }
  0x1e   :  { %p1650_p1 = pnand %p1649_p0, %p1643_p11 }
  0x20   :  { %1653 = shalt.err (!%p1650_p1)
}
  0x21   :  { %s1698_s0 = smov 128   ;;  %s1699_s23 = smov 8  }
  0x22   :  { %36 = dma.hbm_to_vmem [thread:$0]  %s2019_s1, 4096, %s1761_s27, [#allocation9], %s1698_s0, %s1698_s0, %s1699_s23  }
  0x23   :  { %1676 = dma.done.wait [#allocation6], 256  }
  0x24   :  { %1677 = vsyncadd [#allocation6], 4294967040 }
  0x25   :  { %1678 = dma.done.wait [#allocation9], 4096  }
  0x26   :  { %1679 = vsyncadd [#allocation9], 4294963200  ;;  %s55_s26 = sld [smem:[#allocation0]]   ;;  %s1700_s28 = smov 896   ;;  %v158_v36 = vlaneseq }
  0x27   :  { %67 = sst [smem:[#allocation12]] %s1700_s28  ;;  %s1701_s29 = smov 7  }
  0x28   :  { %69 = sst [smem:[#allocation12 + $0x1]] %s1700_s28  ;;  %s1702_s30 = smov [#allocation3]   ;;  %v1822_v37 = vshrl.u32 %v158_v36, 7 }
  0x29   :  { %71 = sst [smem:[#allocation12 + $0x2]] %s1701_s29  ;;  %s63_s8 = sshll.u32 %s1702_s30, 4  ;;  %s64_s8 = int_to_ptr.vmem [resolvable:$true] %s63_s8 }
  0x2a   :  { %75 = sst [smem:[#allocation12 + $0x4]] %s1698_s0  ;;  %s1703_s9 = smov 448   ;;  %v1825_v38 = vsub.s32 0, %v1822_v37  ;;  %v1831_v40 = vsub.s32 1, %v1822_v37 }
  0x2b   :  { %79 = sst [smem:[#allocation12 + $0x6]] %s1703_s9  ;;  %s1704_s11 = smov 64  }
  0x2c   :  { %s1461_s10 = sshll.u32 %s55_s26, 26  ;;  %73 = sst [smem:[#allocation12 + $0x3]] %s1704_s11 }
  0x2d   :  { %s1796_s1 = sadd.s32 134217728, %s1461_s10  ;;  %s1705_s27 = smov 2  }
  0x2e   :  { %77 = sst [smem:[#allocation12 + $0x5]] %s1705_s27  ;;  %s1706_s12 = smov 4  }
  0x2f   :  { %81 = sst [smem:[#allocation12 + $0x7]] %s1704_s11  ;;  %s1707_s13 = smov [#allocation4 + $0x2]  }
  0x30   :  { %83 = sst [smem:[#allocation12 + $0x8]] %s1706_s12  ;;  %s1708_s14 = smov [#allocation11]  }
  0x31   :  { %85 = dma.general %s2023_s5, 14336, %s64_s8, %s1707_s13, %s1708_s14, [#allocation12], %s1796_s1, 0  }
  0x32   :  { %s1709_s17 = smov 256   ;;  %s1710_s18 = smov [#allocation2]  }
  0x33   :  { %101 = sst [smem:[#allocation14]] %s1709_s17  ;;  %s97_s19 = sshll.u32 %s1710_s18, 4  ;;  %s1810_s19 = int_to_ptr.vmem [resolvable:$true] %s97_s19 }
  0x34   :  { %103 = sst [smem:[#allocation14 + $0x1]] %s1709_s17  ;;  %s1711_s5 = smov [#allocation4]  }
  0x35   :  { %105 = sst [smem:[#allocation14 + $0x2]] %s1705_s27  ;;  %s1712_s20 = smov [#allocation13]  }
  0x36   :  { %107 = sst [smem:[#allocation14 + $0x3]] %s1704_s11 }
  0x37   :  { %109 = sst [smem:[#allocation14 + $0x4]] %s1698_s0 }
  0x38   :  { %111 = sst [smem:[#allocation14 + $0x5]] %s1705_s27 }
  0x39   :  { %113 = sst [smem:[#allocation14 + $0x6]] %s1698_s0 }
  0x3a   :  { %115 = sst [smem:[#allocation14 + $0x7]] %s1704_s11 }
  0x3b   :  { %117 = sst [smem:[#allocation14 + $0x8]] %s1706_s12 }
  0x3c   :  { %119 = dma.general %s2021_s3, 4096, %s1810_s19, %s1711_s5, %s1712_s20, [#allocation14], %s1796_s1, 0  }
  0x3d   :  { %v1562_v0 = vld [vmem:[#allocation8 + $0x4] ss:$8 sps:$4 sm:$0xff]   ;;  %v1564_v1 = vld [vmem:[#allocation8] ss:$8 sps:$4 sm:$0xff]   ;;  %v1565_v2 = vld [vmem:[#allocation8 + $0x14] ss:$8 sps:$4 sm:$0xff]  }
  0x3e   :  { %328 = vmatprep.subr.bf16.mxu0 %v1562_v0  ;;  %v1567_v3 = vld [vmem:[#allocation8 + $0x10] ss:$8 sps:$4 sm:$0xff]   ;;  %v1568_v4 = vld [vmem:[#allocation8 + $0x24] ss:$8 sps:$4 sm:$0xff]   ;;  %v1570_v5 = vld [vmem:[#allocation8 + $0x20] ss:$8 sps:$4 sm:$0xff]  }
  0x3f   :  { %329 = vmatpush1.bf16.msra.mxu0 %v1564_v1  ;;  %v1571_v6 = vld [vmem:[#allocation8 + $0x34] ss:$8 sps:$4 sm:$0xff]   ;;  %v1573_v7 = vld [vmem:[#allocation8 + $0x30] ss:$8 sps:$4 sm:$0xff]   ;;  %v1574_v8 = vld [vmem:[#allocation8 + $0x44] ss:$8 sps:$4 sm:$0xff]  }
  0x40   :  { %330 = vmatprep.subr.bf16.mxu0 %v1565_v2  ;;  %v1576_v9 = vld [vmem:[#allocation8 + $0x40] ss:$8 sps:$4 sm:$0xff]   ;;  %v1577_v10 = vld [vmem:[#allocation8 + $0x54] ss:$8 sps:$4 sm:$0xff]   ;;  %v1579_v11 = vld [vmem:[#allocation8 + $0x50] ss:$8 sps:$4 sm:$0xff]  }
  0x41   :  { %v1580_v12 = vld [vmem:[#allocation8 + $0x64] ss:$8 sps:$4 sm:$0xff]   ;;  %v121_v13 = vld [vmem:[#allocation5 + $0x8] sm:$0xff]  ;;  %v1582_v15 = vld [vmem:[#allocation8 + $0x60] ss:$8 sps:$4 sm:$0xff]  }
  0x42   :  { %v123_v14 = vpack.c.bf16 %v121_v13, %v121_v13  ;;  %v1583_v16 = vld [vmem:[#allocation8 + $0x74] ss:$8 sps:$4 sm:$0xff]   ;;  %v1585_v17 = vld [vmem:[#allocation8 + $0x70] ss:$8 sps:$4 sm:$0xff]   ;;  %v1586_v18 = vld [vmem:[#allocation8 + $0x84] ss:$8 sps:$4 sm:$0xff]  }
  0x43   :  { %331 = vmatpush1.bf16.msra.mxu0 %v1567_v3  ;;  %v1588_v19 = vld [vmem:[#allocation8 + $0x80] ss:$8 sps:$4 sm:$0xff]   ;;  %v1589_v20 = vld [vmem:[#allocation8 + $0x94] ss:$8 sps:$4 sm:$0xff]   ;;  %v1591_v21 = vld [vmem:[#allocation8 + $0x90] ss:$8 sps:$4 sm:$0xff]  }
  0x44   :  { %332 = vmatprep.subr.bf16.mxu0 %v1568_v4  ;;  %360 = vmatprep.mubr.bf16.mxu0 %v123_v14  ;;  %v1592_v22 = vld [vmem:[#allocation8 + $0xa4] ss:$8 sps:$4 sm:$0xff]   ;;  %v1594_v23 = vld [vmem:[#allocation8 + $0xa0] ss:$8 sps:$4 sm:$0xff]   ;;  %v1595_v24 = vld [vmem:[#allocation8 + $0xb4] ss:$8 sps:$4 sm:$0xff]  }
  0x45   :  { %v1597_v25 = vld [vmem:[#allocation8 + $0xb0] ss:$8 sps:$4 sm:$0xff]   ;;  %v1598_v26 = vld [vmem:[#allocation8 + $0xc4] ss:$8 sps:$4 sm:$0xff]   ;;  %v1600_v27 = vld [vmem:[#allocation8 + $0xc0] ss:$8 sps:$4 sm:$0xff]  }
  0x46   :  { %v1601_v28 = vld [vmem:[#allocation8 + $0xd4] ss:$8 sps:$4 sm:$0xff]   ;;  %v1603_v29 = vld [vmem:[#allocation8 + $0xd0] ss:$8 sps:$4 sm:$0xff]   ;;  %v1604_v30 = vld [vmem:[#allocation8 + $0xe4] ss:$8 sps:$4 sm:$0xff]  }
  0x47   :  { %333 = vmatpush1.bf16.msra.mxu0 %v1570_v5  ;;  %v1606_v31 = vld [vmem:[#allocation8 + $0xe0] ss:$8 sps:$4 sm:$0xff]   ;;  %v1607_v32 = vld [vmem:[#allocation8 + $0xf4] ss:$8 sps:$4 sm:$0xff]   ;;  %v1609_v33 = vld [vmem:[#allocation8 + $0xf0] ss:$8 sps:$4 sm:$0xff]  }
  0x48   :  { %334 = vmatprep.subr.bf16.mxu0 %v1571_v6  ;;  %v120_v34 = vld [vmem:[#allocation5] sm:$0xff] }
  0x49   :  { %v122_v35 = vpack.c.bf16 %v120_v34, %v120_v34  ;;  %v156_v39 = vld [vmem:[%s2020_s2] sm:$0x3] }
  0x4a   :  { %v161_v41 = vrot.slane %v156_v39, %v1825_v38  ;;  %v165_v42 = vrot.slane %v156_v39, %v1831_v40 }
  0x4b   :  { %335 = vmatpush1.bf16.msra.mxu0 %v1573_v7 }
  0x4c   :  { %336 = vmatprep.subr.bf16.mxu0 %v1574_v8 }
  0x4f   :  { %337 = vmatpush1.bf16.msra.mxu0 %v1576_v9 }
  0x50   :  { %338 = vmatprep.subr.bf16.mxu0 %v1577_v10 }
  0x53   :  { %339 = vmatpush1.bf16.msra.mxu0 %v1579_v11 }
  0x54   :  { %340 = vmatprep.subr.bf16.mxu0 %v1580_v12 }
  0x57   :  { %341 = vmatpush1.bf16.msra.mxu0 %v1582_v15 }
  0x58   :  { %342 = vmatprep.subr.bf16.mxu0 %v1583_v16 }
  0x5b   :  { %343 = vmatpush1.bf16.msra.mxu0 %v1585_v17 }
  0x5c   :  { %344 = vmatprep.subr.bf16.mxu0 %v1586_v18 }
  0x5f   :  { %345 = vmatpush1.bf16.msra.mxu0 %v1588_v19 }
  0x60   :  { %346 = vmatprep.subr.bf16.mxu0 %v1589_v20 }
  0x63   :  { %347 = vmatpush1.bf16.msra.mxu0 %v1591_v21 }
  0x64   :  { %348 = vmatprep.subr.bf16.mxu0 %v1592_v22 }
  0x67   :  { %349 = vmatpush1.bf16.msra.mxu0 %v1594_v23 }
  0x68   :  { %350 = vmatprep.subr.bf16.mxu0 %v1595_v24 }
  0x6b   :  { %351 = vmatpush1.bf16.msra.mxu0 %v1597_v25 }
  0x6c   :  { %352 = vmatprep.subr.bf16.mxu0 %v1598_v26 }
  0x6f   :  { %353 = vmatpush1.bf16.msra.mxu0 %v1600_v27 }
  0x70   :  { %354 = vmatprep.subr.bf16.mxu0 %v1601_v28 }
  0x73   :  { %355 = vmatpush1.bf16.msra.mxu0 %v1603_v29 }
  0x74   :  { %356 = vmatprep.subr.bf16.mxu0 %v1604_v30 }
  0x77   :  { %357 = vmatpush1.bf16.msra.mxu0 %v1606_v31 }
  0x78   :  { %358 = vmatprep.subr.bf16.mxu0 %v1607_v32 }
  0x7b   :  { %359 = vmatpush1.bf16.msra.mxu0 %v1609_v33 }
  0x7e   :  { %361 = vmatmul.mubr.bf16.vlgmr.msra.gmra.mrb[0].mxu0 %v122_v35 }
 0x151   :  { %v362_v43 = vpop.f32.mrb[0].mxu0 }
 0x152   :  { %v1835_v44 = vadd.f32 %v362_v43, %v161_v41  ;;  %v364_v45 = vpop.f32.mrb[1].mxu0 }
 0x153   :  { %v365_v46 = vadd.f32 %v364_v45, %v165_v42  ;;  %v366_v47 = vpop.f32.mrb[2].mxu0 }
 0x154   :  { %v369_v48 = vmax.f32 %v1835_v44, 0.0  ;;  %v367_v49 = vpop.f32.mrb[3].mxu0 }
 0x155   :  { %v370_v50 = vmax.f32 %v365_v46, 0.0 }
 0x156   :  { %1680 = dma.done.wait [#allocation4], 4096 }
 0x157   :  { %1681 = vsyncadd [#allocation4], 4294963200  ;;  %v413_v51 = vpack.c.bf16 %v370_v50, %v370_v50  ;;  %393 = sst [smem:[#allocation16]] %s1709_s17  ;;  %s1713_s2 = smov [#allocation2 + $0x100]   ;;  %v412_v20 = vpack.c.bf16 %v369_v48, %v369_v48 }
 0x158   :  { %395 = sst [smem:[#allocation16 + $0x1]] %s1709_s17  ;;  %s389_s25 = sshll.u32 %s1713_s2, 4  ;;  %s1846_s25 = int_to_ptr.vmem [resolvable:$true] %s389_s25 }
 0x159   :  { %490 = vmatprep.mubr.bf16.mxu1 %v413_v51  ;;  %397 = sst [smem:[#allocation16 + $0x2]] %s1705_s27  ;;  %s375_s29 = scalar_lea.hbm %s2021_s3, 4096 }
 0x15a   :  { %399 = sst [smem:[#allocation16 + $0x3]] %s1704_s11  ;;  %s1714_s30 = smov [#allocation4 + $0x1]  }
 0x15b   :  { %401 = sst [smem:[#allocation16 + $0x4]] %s1698_s0  ;;  %s1715_s8 = smov [#allocation15]  }
 0x15c   :  { %403 = sst [smem:[#allocation16 + $0x5]] %s1705_s27 }
 0x15d   :  { %405 = sst [smem:[#allocation16 + $0x6]] %s1698_s0 }
 0x15e   :  { %407 = sst [smem:[#allocation16 + $0x7]] %s1704_s11 }
 0x15f   :  { %409 = sst [smem:[#allocation16 + $0x8]] %s1706_s12 }
 0x160   :  { %411 = dma.general %s375_s29, 4096, %s1846_s25, %s1714_s30, %s1715_s8, [#allocation16], %s1796_s1, 0  }
 0x161   :  { %v415_v52 = vld [vmem:[#allocation2 + $0x8] sm:$0xff]  ;;  %v414_v53 = vld [vmem:[#allocation2] sm:$0xff]  ;;  %v417_v54 = vld [vmem:[#allocation2 + $0x18] sm:$0xff] }
 0x162   :  { %458 = vmatprep.subr.bf16.mxu1 %v415_v52  ;;  %v416_v55 = vld [vmem:[#allocation2 + $0x10] sm:$0xff]  ;;  %v419_v56 = vld [vmem:[#allocation2 + $0x28] sm:$0xff]  ;;  %v418_v57 = vld [vmem:[#allocation2 + $0x20] sm:$0xff] }
 0x163   :  { %459 = vmatpush1.bf16.msra.mxu1 %v414_v53  ;;  %v421_v58 = vld [vmem:[#allocation2 + $0x38] sm:$0xff]  ;;  %v420_v59 = vld [vmem:[#allocation2 + $0x30] sm:$0xff]  ;;  %v423_v60 = vld [vmem:[#allocation2 + $0x48] sm:$0xff] }
 0x164   :  { %460 = vmatprep.subr.bf16.mxu1 %v417_v54  ;;  %v422_v61 = vld [vmem:[#allocation2 + $0x40] sm:$0xff]  ;;  %v425_v62 = vld [vmem:[#allocation2 + $0x58] sm:$0xff]  ;;  %v424_v63 = vld [vmem:[#allocation2 + $0x50] sm:$0xff] }
 0x165   :  { %v427_v0 = vld [vmem:[#allocation2 + $0x68] sm:$0xff]  ;;  %v426_v1 = vld [vmem:[#allocation2 + $0x60] sm:$0xff]  ;;  %v429_v2 = vld [vmem:[#allocation2 + $0x78] sm:$0xff] }
 0x166   :  { %v428_v3 = vld [vmem:[#allocation2 + $0x70] sm:$0xff]  ;;  %v431_v4 = vld [vmem:[#allocation2 + $0x88] sm:$0xff]  ;;  %v430_v5 = vld [vmem:[#allocation2 + $0x80] sm:$0xff] }
 0x167   :  { %461 = vmatpush1.bf16.msra.mxu1 %v416_v55  ;;  %v433_v6 = vld [vmem:[#allocation2 + $0x98] sm:$0xff]  ;;  %v432_v7 = vld [vmem:[#allocation2 + $0x90] sm:$0xff]  ;;  %v435_v8 = vld [vmem:[#allocation2 + $0xa8] sm:$0xff] }
 0x168   :  { %462 = vmatprep.subr.bf16.mxu1 %v419_v56  ;;  %v434_v9 = vld [vmem:[#allocation2 + $0xa0] sm:$0xff]  ;;  %v437_v10 = vld [vmem:[#allocation2 + $0xb8] sm:$0xff]  ;;  %v436_v11 = vld [vmem:[#allocation2 + $0xb0] sm:$0xff] }
 0x169   :  { %v439_v12 = vld [vmem:[#allocation2 + $0xc8] sm:$0xff]  ;;  %v438_v13 = vld [vmem:[#allocation2 + $0xc0] sm:$0xff]  ;;  %v441_v14 = vld [vmem:[#allocation2 + $0xd8] sm:$0xff] }
 0x16a   :  { %v440_v15 = vld [vmem:[#allocation2 + $0xd0] sm:$0xff]  ;;  %v443_v16 = vld [vmem:[#allocation2 + $0xe8] sm:$0xff]  ;;  %v442_v17 = vld [vmem:[#allocation2 + $0xe0] sm:$0xff] }
 0x16b   :  { %463 = vmatpush1.bf16.msra.mxu1 %v418_v57  ;;  %v445_v18 = vld [vmem:[#allocation2 + $0xf8] sm:$0xff]  ;;  %v444_v19 = vld [vmem:[#allocation2 + $0xf0] sm:$0xff]  ;;  %v446_v21 = vld [vmem:[%s2022_s4] sm:$0x3] }
 0x16c   :  { %464 = vmatprep.subr.bf16.mxu1 %v421_v58  ;;  %v451_v22 = vrot.slane %v446_v21, %v1825_v38  ;;  %v455_v23 = vrot.slane %v446_v21, %v1831_v40 }
 0x16f   :  { %465 = vmatpush1.bf16.msra.mxu1 %v420_v59 }
 0x170   :  { %466 = vmatprep.subr.bf16.mxu1 %v423_v60 }
 0x173   :  { %467 = vmatpush1.bf16.msra.mxu1 %v422_v61 }
 0x174   :  { %468 = vmatprep.subr.bf16.mxu1 %v425_v62 }
 0x177   :  { %469 = vmatpush1.bf16.msra.mxu1 %v424_v63 }
 0x178   :  { %470 = vmatprep.subr.bf16.mxu1 %v427_v0 }
 0x17b   :  { %471 = vmatpush1.bf16.msra.mxu1 %v426_v1 }
 0x17c   :  { %472 = vmatprep.subr.bf16.mxu1 %v429_v2 }
 0x17f   :  { %473 = vmatpush1.bf16.msra.mxu1 %v428_v3 }
 0x180   :  { %474 = vmatprep.subr.bf16.mxu1 %v431_v4 }
 0x183   :  { %475 = vmatpush1.bf16.msra.mxu1 %v430_v5 }
 0x184   :  { %476 = vmatprep.subr.bf16.mxu1 %v433_v6 }
 0x187   :  { %477 = vmatpush1.bf16.msra.mxu1 %v432_v7 }
 0x188   :  { %478 = vmatprep.subr.bf16.mxu1 %v435_v8 }
 0x18b   :  { %479 = vmatpush1.bf16.msra.mxu1 %v434_v9 }
 0x18c   :  { %480 = vmatprep.subr.bf16.mxu1 %v437_v10 }
 0x18f   :  { %481 = vmatpush1.bf16.msra.mxu1 %v436_v11 }
 0x190   :  { %482 = vmatprep.subr.bf16.mxu1 %v439_v12 }
 0x193   :  { %483 = vmatpush1.bf16.msra.mxu1 %v438_v13 }
 0x194   :  { %484 = vmatprep.subr.bf16.mxu1 %v441_v14 }
 0x197   :  { %485 = vmatpush1.bf16.msra.mxu1 %v440_v15 }
 0x198   :  { %486 = vmatprep.subr.bf16.mxu1 %v443_v16 }
 0x19b   :  { %487 = vmatpush1.bf16.msra.mxu1 %v442_v17 }
 0x19c   :  { %488 = vmatprep.subr.bf16.mxu1 %v445_v18 }
 0x19f   :  { %489 = vmatpush1.bf16.msra.mxu1 %v444_v19 }
 0x1a2   :  { %491 = vmatmul.mubr.bf16.vlgmr.msra.gmra.mrb[0].mxu1 %v412_v20 }
 0x275   :  { %v492_v24 = vpop.f32.mrb[0].mxu1 }
 0x276   :  { %v1863_v25 = vadd.f32 %v492_v24, %v451_v22  ;;  %v494_v26 = vpop.f32.mrb[1].mxu1 }
 0x277   :  { %v495_v27 = vadd.f32 %v494_v26, %v455_v23  ;;  %v496_v28 = vpop.f32.mrb[2].mxu1 }
 0x278   :  { %v499_v29 = vmax.f32 %v1863_v25, 0.0  ;;  %v497_v30 = vpop.f32.mrb[3].mxu1 }
 0x279   :  { %v500_v31 = vmax.f32 %v495_v27, 0.0 }
 0x27a   :  { %1682 = dma.done.wait [#allocation4 + $0x1], 4096 }
 0x27b   :  { %1683 = vsyncadd [#allocation4 + $0x1], 4294963200  ;;  %v539_v32 = vpack.c.bf16 %v500_v31, %v500_v31  ;;  %519 = sst [smem:[#allocation18]] %s1709_s17  ;;  %s503_s15 = scalar_lea.hbm %s2021_s3, 8192  ;;  %v538_v4 = vpack.c.bf16 %v499_v29, %v499_v29 }
 0x27c   :  { %521 = sst [smem:[#allocation18 + $0x1]] %s1709_s17  ;;  %s1716_s16 = smov [#allocation17]  }
 0x27d   :  { %617 = vmatprep.mubr.bf16.mxu0 %v539_v32  ;;  %523 = sst [smem:[#allocation18 + $0x2]] %s1705_s27 }
 0x27e   :  { %525 = sst [smem:[#allocation18 + $0x3]] %s1704_s11 }
 0x27f   :  { %527 = sst [smem:[#allocation18 + $0x4]] %s1698_s0 }
 0x280   :  { %529 = sst [smem:[#allocation18 + $0x5]] %s1705_s27 }
 0x281   :  { %531 = sst [smem:[#allocation18 + $0x6]] %s1698_s0 }
 0x282   :  { %533 = sst [smem:[#allocation18 + $0x7]] %s1704_s11 }
 0x283   :  { %535 = sst [smem:[#allocation18 + $0x8]] %s1706_s12 }
 0x284   :  { %537 = dma.general %s503_s15, 4096, %s1810_s19, %s1711_s5, %s1716_s16, [#allocation18], %s1796_s1, 0  }
 0x285   :  { %v541_v33 = vld [vmem:[#allocation2 + $0x108] sm:$0xff]  ;;  %v540_v34 = vld [vmem:[#allocation2 + $0x100] sm:$0xff]  ;;  %v543_v35 = vld [vmem:[#allocation2 + $0x118] sm:$0xff] }
 0x286   :  { %585 = vmatprep.subr.bf16.mxu0 %v541_v33  ;;  %v542_v36 = vld [vmem:[#allocation2 + $0x110] sm:$0xff]  ;;  %v545_v39 = vld [vmem:[#allocation2 + $0x128] sm:$0xff]  ;;  %v544_v41 = vld [vmem:[#allocation2 + $0x120] sm:$0xff] }
 0x287   :  { %586 = vmatpush1.bf16.msra.mxu0 %v540_v34  ;;  %v547_v42 = vld [vmem:[#allocation2 + $0x138] sm:$0xff]  ;;  %v546_v43 = vld [vmem:[#allocation2 + $0x130] sm:$0xff]  ;;  %v549_v44 = vld [vmem:[#allocation2 + $0x148] sm:$0xff] }
 0x288   :  { %587 = vmatprep.subr.bf16.mxu0 %v543_v35  ;;  %v548_v45 = vld [vmem:[#allocation2 + $0x140] sm:$0xff]  ;;  %v551_v46 = vld [vmem:[#allocation2 + $0x158] sm:$0xff]  ;;  %v550_v47 = vld [vmem:[#allocation2 + $0x150] sm:$0xff] }
 0x289   :  { %v553_v48 = vld [vmem:[#allocation2 + $0x168] sm:$0xff]  ;;  %v552_v49 = vld [vmem:[#allocation2 + $0x160] sm:$0xff]  ;;  %v555_v50 = vld [vmem:[#allocation2 + $0x178] sm:$0xff] }
 0x28a   :  { %v554_v51 = vld [vmem:[#allocation2 + $0x170] sm:$0xff]  ;;  %v557_v52 = vld [vmem:[#allocation2 + $0x188] sm:$0xff]  ;;  %v556_v53 = vld [vmem:[#allocation2 + $0x180] sm:$0xff] }
 0x28b   :  { %588 = vmatpush1.bf16.msra.mxu0 %v542_v36  ;;  %v559_v54 = vld [vmem:[#allocation2 + $0x198] sm:$0xff]  ;;  %v558_v55 = vld [vmem:[#allocation2 + $0x190] sm:$0xff]  ;;  %v561_v56 = vld [vmem:[#allocation2 + $0x1a8] sm:$0xff] }
 0x28c   :  { %589 = vmatprep.subr.bf16.mxu0 %v545_v39  ;;  %v560_v57 = vld [vmem:[#allocation2 + $0x1a0] sm:$0xff]  ;;  %v563_v58 = vld [vmem:[#allocation2 + $0x1b8] sm:$0xff]  ;;  %v562_v59 = vld [vmem:[#allocation2 + $0x1b0] sm:$0xff] }
 0x28d   :  { %v565_v60 = vld [vmem:[#allocation2 + $0x1c8] sm:$0xff]  ;;  %v564_v61 = vld [vmem:[#allocation2 + $0x1c0] sm:$0xff]  ;;  %v567_v62 = vld [vmem:[#allocation2 + $0x1d8] sm:$0xff] }
 0x28e   :  { %v566_v63 = vld [vmem:[#allocation2 + $0x1d0] sm:$0xff]  ;;  %v569_v0 = vld [vmem:[#allocation2 + $0x1e8] sm:$0xff]  ;;  %v568_v1 = vld [vmem:[#allocation2 + $0x1e0] sm:$0xff] }
 0x28f   :  { %590 = vmatpush1.bf16.msra.mxu0 %v544_v41  ;;  %v571_v2 = vld [vmem:[#allocation2 + $0x1f8] sm:$0xff]  ;;  %v570_v3 = vld [vmem:[#allocation2 + $0x1f0] sm:$0xff]  ;;  %v1501_v5 = vld [vmem:[%s2022_s4 + $0x2] sm:$0x3] }
 0x290   :  { %591 = vmatprep.subr.bf16.mxu0 %v547_v42  ;;  %v578_v6 = vrot.slane %v1501_v5, %v1825_v38  ;;  %v582_v7 = vrot.slane %v1501_v5, %v1831_v40 }
 0x293   :  { %592 = vmatpush1.bf16.msra.mxu0 %v546_v43 }
 0x294   :  { %593 = vmatprep.subr.bf16.mxu0 %v549_v44 }
 0x297   :  { %594 = vmatpush1.bf16.msra.mxu0 %v548_v45 }
 0x298   :  { %595 = vmatprep.subr.bf16.mxu0 %v551_v46 }
 0x29b   :  { %596 = vmatpush1.bf16.msra.mxu0 %v550_v47 }
 0x29c   :  { %597 = vmatprep.subr.bf16.mxu0 %v553_v48 }
 0x29f   :  { %598 = vmatpush1.bf16.msra.mxu0 %v552_v49 }
 0x2a0   :  { %599 = vmatprep.subr.bf16.mxu0 %v555_v50 }
 0x2a3   :  { %600 = vmatpush1.bf16.msra.mxu0 %v554_v51 }
 0x2a4   :  { %601 = vmatprep.subr.bf16.mxu0 %v557_v52 }
 0x2a7   :  { %602 = vmatpush1.bf16.msra.mxu0 %v556_v53 }
 0x2a8   :  { %603 = vmatprep.subr.bf16.mxu0 %v559_v54 }
 0x2ab   :  { %604 = vmatpush1.bf16.msra.mxu0 %v558_v55 }
 0x2ac   :  { %605 = vmatprep.subr.bf16.mxu0 %v561_v56 }
 0x2af   :  { %606 = vmatpush1.bf16.msra.mxu0 %v560_v57 }
 0x2b0   :  { %607 = vmatprep.subr.bf16.mxu0 %v563_v58 }
 0x2b3   :  { %608 = vmatpush1.bf16.msra.mxu0 %v562_v59 }
 0x2b4   :  { %609 = vmatprep.subr.bf16.mxu0 %v565_v60 }
 0x2b7   :  { %610 = vmatpush1.bf16.msra.mxu0 %v564_v61 }
 0x2b8   :  { %611 = vmatprep.subr.bf16.mxu0 %v567_v62 }
 0x2bb   :  { %612 = vmatpush1.bf16.msra.mxu0 %v566_v63 }
 0x2bc   :  { %613 = vmatprep.subr.bf16.mxu0 %v569_v0 }
 0x2bf   :  { %614 = vmatpush1.bf16.msra.mxu0 %v568_v1 }
 0x2c0   :  { %615 = vmatprep.subr.bf16.mxu0 %v571_v2 }
 0x2c3   :  { %616 = vmatpush1.bf16.msra.mxu0 %v570_v3 }
 0x2c6   :  { %618 = vmatmul.mubr.bf16.vlgmr.msra.gmra.mrb[4].mxu0 %v538_v4 }
 0x399   :  { %v619_v8 = vpop.f32.mrb[4].mxu0 }
 0x39a   :  { %v1889_v9 = vadd.f32 %v619_v8, %v578_v6  ;;  %v621_v10 = vpop.f32.mrb[5].mxu0 }
 0x39b   :  { %v622_v11 = vadd.f32 %v621_v10, %v582_v7  ;;  %v623_v12 = vpop.f32.mrb[6].mxu0 }
 0x39c   :  { %v626_v13 = vmax.f32 %v1889_v9, 0.0  ;;  %v624_v14 = vpop.f32.mrb[7].mxu0 }
 0x39d   :  { %v627_v15 = vmax.f32 %v622_v11, 0.0 }
 0x39e   :  { %1684 = dma.done.wait [#allocation4], 4096 }
 0x39f   :  { %1685 = vsyncadd [#allocation4], 4294963200  ;;  %v666_v16 = vpack.c.bf16 %v627_v15, %v627_v15  ;;  %646 = sst [smem:[#allocation20]] %s1709_s17  ;;  %s630_s23 = scalar_lea.hbm %s2021_s3, 12288  ;;  %v665_v52 = vpack.c.bf16 %v626_v13, %v626_v13 }
 0x3a0   :  { %648 = sst [smem:[#allocation20 + $0x1]] %s1709_s17  ;;  %s1717_s24 = smov [#allocation19]  }
 0x3a1   :  { %744 = vmatprep.mubr.bf16.mxu1 %v666_v16  ;;  %650 = sst [smem:[#allocation20 + $0x2]] %s1705_s27 }
 0x3a2   :  { %652 = sst [smem:[#allocation20 + $0x3]] %s1704_s11 }
 0x3a3   :  { %654 = sst [smem:[#allocation20 + $0x4]] %s1698_s0 }
 0x3a4   :  { %656 = sst [smem:[#allocation20 + $0x5]] %s1705_s27 }
 0x3a5   :  { %658 = sst [smem:[#allocation20 + $0x6]] %s1698_s0 }
 0x3a6   :  { %660 = sst [smem:[#allocation20 + $0x7]] %s1704_s11 }
 0x3a7   :  { %662 = sst [smem:[#allocation20 + $0x8]] %s1706_s12 }
 0x3a8   :  { %664 = dma.general %s630_s23, 4096, %s1846_s25, %s1714_s30, %s1717_s24, [#allocation20], %s1796_s1, 0  }
 0x3a9   :  { %v668_v17 = vld [vmem:[#allocation2 + $0x8] sm:$0xff]  ;;  %v667_v18 = vld [vmem:[#allocation2] sm:$0xff]  ;;  %v670_v19 = vld [vmem:[#allocation2 + $0x18] sm:$0xff] }
 0x3aa   :  { %712 = vmatprep.subr.bf16.mxu1 %v668_v17  ;;  %v669_v20 = vld [vmem:[#allocation2 + $0x10] sm:$0xff]  ;;  %v672_v21 = vld [vmem:[#allocation2 + $0x28] sm:$0xff]  ;;  %v671_v22 = vld [vmem:[#allocation2 + $0x20] sm:$0xff] }
 0x3ab   :  { %713 = vmatpush1.bf16.msra.mxu1 %v667_v18  ;;  %v674_v23 = vld [vmem:[#allocation2 + $0x38] sm:$0xff]  ;;  %v673_v24 = vld [vmem:[#allocation2 + $0x30] sm:$0xff]  ;;  %v676_v25 = vld [vmem:[#allocation2 + $0x48] sm:$0xff] }
 0x3ac   :  { %714 = vmatprep.subr.bf16.mxu1 %v670_v19  ;;  %v675_v26 = vld [vmem:[#allocation2 + $0x40] sm:$0xff]  ;;  %v678_v27 = vld [vmem:[#allocation2 + $0x58] sm:$0xff]  ;;  %v677_v28 = vld [vmem:[#allocation2 + $0x50] sm:$0xff] }
 0x3ad   :  { %v680_v29 = vld [vmem:[#allocation2 + $0x68] sm:$0xff]  ;;  %v679_v30 = vld [vmem:[#allocation2 + $0x60] sm:$0xff]  ;;  %v682_v31 = vld [vmem:[#allocation2 + $0x78] sm:$0xff] }
 0x3ae   :  { %v681_v32 = vld [vmem:[#allocation2 + $0x70] sm:$0xff]  ;;  %v684_v33 = vld [vmem:[#allocation2 + $0x88] sm:$0xff]  ;;  %v683_v34 = vld [vmem:[#allocation2 + $0x80] sm:$0xff] }
 0x3af   :  { %715 = vmatpush1.bf16.msra.mxu1 %v669_v20  ;;  %v686_v35 = vld [vmem:[#allocation2 + $0x98] sm:$0xff]  ;;  %v685_v36 = vld [vmem:[#allocation2 + $0x90] sm:$0xff]  ;;  %v688_v39 = vld [vmem:[#allocation2 + $0xa8] sm:$0xff] }
 0x3b0   :  { %716 = vmatprep.subr.bf16.mxu1 %v672_v21  ;;  %v687_v41 = vld [vmem:[#allocation2 + $0xa0] sm:$0xff]  ;;  %v690_v42 = vld [vmem:[#allocation2 + $0xb8] sm:$0xff]  ;;  %v689_v43 = vld [vmem:[#allocation2 + $0xb0] sm:$0xff] }
 0x3b1   :  { %v692_v44 = vld [vmem:[#allocation2 + $0xc8] sm:$0xff]  ;;  %v691_v45 = vld [vmem:[#allocation2 + $0xc0] sm:$0xff]  ;;  %v694_v46 = vld [vmem:[#allocation2 + $0xd8] sm:$0xff] }
 0x3b2   :  { %v693_v47 = vld [vmem:[#allocation2 + $0xd0] sm:$0xff]  ;;  %v696_v48 = vld [vmem:[#allocation2 + $0xe8] sm:$0xff]  ;;  %v695_v49 = vld [vmem:[#allocation2 + $0xe0] sm:$0xff] }
 0x3b3   :  { %717 = vmatpush1.bf16.msra.mxu1 %v671_v22  ;;  %v698_v50 = vld [vmem:[#allocation2 + $0xf8] sm:$0xff]  ;;  %v697_v51 = vld [vmem:[#allocation2 + $0xf0] sm:$0xff]  ;;  %v1504_v53 = vld [vmem:[%s2022_s4 + $0x4] sm:$0x3] }
 0x3b4   :  { %718 = vmatprep.subr.bf16.mxu1 %v674_v23  ;;  %v705_v54 = vrot.slane %v1504_v53, %v1825_v38  ;;  %v709_v55 = vrot.slane %v1504_v53, %v1831_v40 }
 0x3b7   :  { %719 = vmatpush1.bf16.msra.mxu1 %v673_v24 }
 0x3b8   :  { %720 = vmatprep.subr.bf16.mxu1 %v676_v25 }
 0x3bb   :  { %721 = vmatpush1.bf16.msra.mxu1 %v675_v26 }
 0x3bc   :  { %722 = vmatprep.subr.bf16.mxu1 %v678_v27 }
 0x3bf   :  { %723 = vmatpush1.bf16.msra.mxu1 %v677_v28 }
 0x3c0   :  { %724 = vmatprep.subr.bf16.mxu1 %v680_v29 }
 0x3c3   :  { %725 = vmatpush1.bf16.msra.mxu1 %v679_v30 }
 0x3c4   :  { %726 = vmatprep.subr.bf16.mxu1 %v682_v31 }
 0x3c7   :  { %727 = vmatpush1.bf16.msra.mxu1 %v681_v32 }
 0x3c8   :  { %728 = vmatprep.subr.bf16.mxu1 %v684_v33 }
 0x3cb   :  { %729 = vmatpush1.bf16.msra.mxu1 %v683_v34 }
 0x3cc   :  { %730 = vmatprep.subr.bf16.mxu1 %v686_v35 }
 0x3cf   :  { %731 = vmatpush1.bf16.msra.mxu1 %v685_v36 }
 0x3d0   :  { %732 = vmatprep.subr.bf16.mxu1 %v688_v39 }
 0x3d3   :  { %733 = vmatpush1.bf16.msra.mxu1 %v687_v41 }
 0x3d4   :  { %734 = vmatprep.subr.bf16.mxu1 %v690_v42 }
 0x3d7   :  { %735 = vmatpush1.bf16.msra.mxu1 %v689_v43 }
 0x3d8   :  { %736 = vmatprep.subr.bf16.mxu1 %v692_v44 }
 0x3db   :  { %737 = vmatpush1.bf16.msra.mxu1 %v691_v45 }
 0x3dc   :  { %738 = vmatprep.subr.bf16.mxu1 %v694_v46 }
 0x3df   :  { %739 = vmatpush1.bf16.msra.mxu1 %v693_v47 }
 0x3e0   :  { %740 = vmatprep.subr.bf16.mxu1 %v696_v48 }
 0x3e3   :  { %741 = vmatpush1.bf16.msra.mxu1 %v695_v49 }
 0x3e4   :  { %742 = vmatprep.subr.bf16.mxu1 %v698_v50 }
 0x3e7   :  { %743 = vmatpush1.bf16.msra.mxu1 %v697_v51 }
 0x3ea   :  { %745 = vmatmul.mubr.bf16.vlgmr.msra.gmra.mrb[4].mxu1 %v665_v52 }
 0x4bd   :  { %v746_v56 = vpop.f32.mrb[4].mxu1 }
 0x4be   :  { %v1915_v57 = vadd.f32 %v746_v56, %v705_v54  ;;  %v748_v58 = vpop.f32.mrb[5].mxu1 }
 0x4bf   :  { %v749_v59 = vadd.f32 %v748_v58, %v709_v55  ;;  %v750_v60 = vpop.f32.mrb[6].mxu1 }
 0x4c0   :  { %v753_v61 = vmax.f32 %v1915_v57, 0.0  ;;  %v751_v62 = vpop.f32.mrb[7].mxu1 }
 0x4c1   :  { %v754_v63 = vmax.f32 %v749_v59, 0.0 }
 0x4c2   :  { %1686 = dma.done.wait [#allocation4 + $0x1], 4096 }
 0x4c3   :  { %1687 = vsyncadd [#allocation4 + $0x1], 4294963200  ;;  %v793_v0 = vpack.c.bf16 %v754_v63, %v754_v63  ;;  %773 = sst [smem:[#allocation22]] %s1709_s17  ;;  %s757_s8 = scalar_lea.hbm %s2021_s3, 16384  ;;  %v792_v33 = vpack.c.bf16 %v753_v61, %v753_v61 }
 0x4c4   :  { %775 = sst [smem:[#allocation22 + $0x1]] %s1709_s17  ;;  %s1718_s9 = smov [#allocation21]  }
 0x4c5   :  { %871 = vmatprep.mubr.bf16.mxu0 %v793_v0  ;;  %777 = sst [smem:[#allocation22 + $0x2]] %s1705_s27 }
 0x4c6   :  { %779 = sst [smem:[#allocation22 + $0x3]] %s1704_s11 }
 0x4c7   :  { %781 = sst [smem:[#allocation22 + $0x4]] %s1698_s0 }
 0x4c8   :  { %783 = sst [smem:[#allocation22 + $0x5]] %s1705_s27 }
 0x4c9   :  { %785 = sst [smem:[#allocation22 + $0x6]] %s1698_s0 }
 0x4ca   :  { %787 = sst [smem:[#allocation22 + $0x7]] %s1704_s11 }
 0x4cb   :  { %789 = sst [smem:[#allocation22 + $0x8]] %s1706_s12 }
 0x4cc   :  { %791 = dma.general %s757_s8, 4096, %s1810_s19, %s1711_s5, %s1718_s9, [#allocation22], %s1796_s1, 0  }
 0x4cd   :  { %v795_v1 = vld [vmem:[#allocation2 + $0x108] sm:$0xff]  ;;  %v794_v2 = vld [vmem:[#allocation2 + $0x100] sm:$0xff]  ;;  %v797_v3 = vld [vmem:[#allocation2 + $0x118] sm:$0xff] }
 0x4ce   :  { %839 = vmatprep.subr.bf16.mxu0 %v795_v1  ;;  %v796_v4 = vld [vmem:[#allocation2 + $0x110] sm:$0xff]  ;;  %v799_v5 = vld [vmem:[#allocation2 + $0x128] sm:$0xff]  ;;  %v798_v6 = vld [vmem:[#allocation2 + $0x120] sm:$0xff] }
 0x4cf   :  { %840 = vmatpush1.bf16.msra.mxu0 %v794_v2  ;;  %v801_v7 = vld [vmem:[#allocation2 + $0x138] sm:$0xff]  ;;  %v800_v8 = vld [vmem:[#allocation2 + $0x130] sm:$0xff]  ;;  %v803_v9 = vld [vmem:[#allocation2 + $0x148] sm:$0xff] }
 0x4d0   :  { %841 = vmatprep.subr.bf16.mxu0 %v797_v3  ;;  %v802_v10 = vld [vmem:[#allocation2 + $0x140] sm:$0xff]  ;;  %v805_v11 = vld [vmem:[#allocation2 + $0x158] sm:$0xff]  ;;  %v804_v12 = vld [vmem:[#allocation2 + $0x150] sm:$0xff] }
 0x4d1   :  { %v807_v13 = vld [vmem:[#allocation2 + $0x168] sm:$0xff]  ;;  %v806_v14 = vld [vmem:[#allocation2 + $0x160] sm:$0xff]  ;;  %v809_v15 = vld [vmem:[#allocation2 + $0x178] sm:$0xff] }
 0x4d2   :  { %v808_v16 = vld [vmem:[#allocation2 + $0x170] sm:$0xff]  ;;  %v811_v17 = vld [vmem:[#allocation2 + $0x188] sm:$0xff]  ;;  %v810_v18 = vld [vmem:[#allocation2 + $0x180] sm:$0xff] }
 0x4d3   :  { %842 = vmatpush1.bf16.msra.mxu0 %v796_v4  ;;  %v813_v19 = vld [vmem:[#allocation2 + $0x198] sm:$0xff]  ;;  %v812_v20 = vld [vmem:[#allocation2 + $0x190] sm:$0xff]  ;;  %v815_v21 = vld [vmem:[#allocation2 + $0x1a8] sm:$0xff] }
 0x4d4   :  { %843 = vmatprep.subr.bf16.mxu0 %v799_v5  ;;  %v814_v22 = vld [vmem:[#allocation2 + $0x1a0] sm:$0xff]  ;;  %v817_v23 = vld [vmem:[#allocation2 + $0x1b8] sm:$0xff]  ;;  %v816_v24 = vld [vmem:[#allocation2 + $0x1b0] sm:$0xff] }
 0x4d5   :  { %v819_v25 = vld [vmem:[#allocation2 + $0x1c8] sm:$0xff]  ;;  %v818_v26 = vld [vmem:[#allocation2 + $0x1c0] sm:$0xff]  ;;  %v821_v27 = vld [vmem:[#allocation2 + $0x1d8] sm:$0xff] }
 0x4d6   :  { %v820_v28 = vld [vmem:[#allocation2 + $0x1d0] sm:$0xff]  ;;  %v823_v29 = vld [vmem:[#allocation2 + $0x1e8] sm:$0xff]  ;;  %v822_v30 = vld [vmem:[#allocation2 + $0x1e0] sm:$0xff] }
 0x4d7   :  { %844 = vmatpush1.bf16.msra.mxu0 %v798_v6  ;;  %v825_v31 = vld [vmem:[#allocation2 + $0x1f8] sm:$0xff]  ;;  %v824_v32 = vld [vmem:[#allocation2 + $0x1f0] sm:$0xff]  ;;  %v1507_v34 = vld [vmem:[%s2022_s4 + $0x6] sm:$0x3] }
 0x4d8   :  { %845 = vmatprep.subr.bf16.mxu0 %v801_v7  ;;  %v832_v35 = vrot.slane %v1507_v34, %v1825_v38  ;;  %v836_v36 = vrot.slane %v1507_v34, %v1831_v40 }
 0x4db   :  { %846 = vmatpush1.bf16.msra.mxu0 %v800_v8 }
 0x4dc   :  { %847 = vmatprep.subr.bf16.mxu0 %v803_v9 }
 0x4df   :  { %848 = vmatpush1.bf16.msra.mxu0 %v802_v10 }
 0x4e0   :  { %849 = vmatprep.subr.bf16.mxu0 %v805_v11 }
 0x4e3   :  { %850 = vmatpush1.bf16.msra.mxu0 %v804_v12 }
 0x4e4   :  { %851 = vmatprep.subr.bf16.mxu0 %v807_v13 }
 0x4e7   :  { %852 = vmatpush1.bf16.msra.mxu0 %v806_v14 }
 0x4e8   :  { %853 = vmatprep.subr.bf16.mxu0 %v809_v15 }
 0x4eb   :  { %854 = vmatpush1.bf16.msra.mxu0 %v808_v16 }
 0x4ec   :  { %855 = vmatprep.subr.bf16.mxu0 %v811_v17 }
 0x4ef   :  { %856 = vmatpush1.bf16.msra.mxu0 %v810_v18 }
 0x4f0   :  { %857 = vmatprep.subr.bf16.mxu0 %v813_v19 }
 0x4f3   :  { %858 = vmatpush1.bf16.msra.mxu0 %v812_v20 }
 0x4f4   :  { %859 = vmatprep.subr.bf16.mxu0 %v815_v21 }
 0x4f7   :  { %860 = vmatpush1.bf16.msra.mxu0 %v814_v22 }
 0x4f8   :  { %861 = vmatprep.subr.bf16.mxu0 %v817_v23 }
 0x4fb   :  { %862 = vmatpush1.bf16.msra.mxu0 %v816_v24 }
 0x4fc   :  { %863 = vmatprep.subr.bf16.mxu0 %v819_v25 }
 0x4ff   :  { %864 = vmatpush1.bf16.msra.mxu0 %v818_v26 }
 0x500   :  { %865 = vmatprep.subr.bf16.mxu0 %v821_v27 }
 0x503   :  { %866 = vmatpush1.bf16.msra.mxu0 %v820_v28 }
 0x504   :  { %867 = vmatprep.subr.bf16.mxu0 %v823_v29 }
 0x507   :  { %868 = vmatpush1.bf16.msra.mxu0 %v822_v30 }
 0x508   :  { %869 = vmatprep.subr.bf16.mxu0 %v825_v31 }
 0x50b   :  { %870 = vmatpush1.bf16.msra.mxu0 %v824_v32 }
 0x50e   :  { %872 = vmatmul.mubr.bf16.vlgmr.msra.gmra.mrb[8].mxu0 %v792_v33 }
 0x5e1   :  { %v873_v39 = vpop.f32.mrb[8].mxu0 }
 0x5e2   :  { %v1941_v41 = vadd.f32 %v873_v39, %v832_v35  ;;  %v875_v42 = vpop.f32.mrb[9].mxu0 }
 0x5e3   :  { %v876_v43 = vadd.f32 %v875_v42, %v836_v36  ;;  %v877_v44 = vpop.f32.mrb[10].mxu0 }
 0x5e4   :  { %v880_v45 = vmax.f32 %v1941_v41, 0.0  ;;  %v878_v46 = vpop.f32.mrb[11].mxu0 }
 0x5e5   :  { %v881_v47 = vmax.f32 %v876_v43, 0.0 }
 0x5e6   :  { %1688 = dma.done.wait [#allocation4], 4096 }
 0x5e7   :  { %1689 = vsyncadd [#allocation4], 4294963200  ;;  %v920_v48 = vpack.c.bf16 %v881_v47, %v881_v47  ;;  %900 = sst [smem:[#allocation24]] %s1709_s17  ;;  %s884_s14 = scalar_lea.hbm %s2021_s3, 20480  ;;  %v919_v17 = vpack.c.bf16 %v880_v45, %v880_v45 }
 0x5e8   :  { %902 = sst [smem:[#allocation24 + $0x1]] %s1709_s17  ;;  %s1719_s17 = smov [#allocation23]  }
 0x5e9   :  { %998 = vmatprep.mubr.bf16.mxu1 %v920_v48  ;;  %904 = sst [smem:[#allocation24 + $0x2]] %s1705_s27 }
 0x5ea   :  { %906 = sst [smem:[#allocation24 + $0x3]] %s1704_s11 }
 0x5eb   :  { %908 = sst [smem:[#allocation24 + $0x4]] %s1698_s0 }
 0x5ec   :  { %910 = sst [smem:[#allocation24 + $0x5]] %s1705_s27 }
 0x5ed   :  { %912 = sst [smem:[#allocation24 + $0x6]] %s1698_s0 }
 0x5ee   :  { %914 = sst [smem:[#allocation24 + $0x7]] %s1704_s11 }
 0x5ef   :  { %916 = sst [smem:[#allocation24 + $0x8]] %s1706_s12 }
 0x5f0   :  { %918 = dma.general %s884_s14, 4096, %s1846_s25, %s1714_s30, %s1719_s17, [#allocation24], %s1796_s1, 0  }
 0x5f1   :  { %v922_v49 = vld [vmem:[#allocation2 + $0x8] sm:$0xff]  ;;  %v921_v50 = vld [vmem:[#allocation2] sm:$0xff]  ;;  %v924_v51 = vld [vmem:[#allocation2 + $0x18] sm:$0xff] }
 0x5f2   :  { %966 = vmatprep.subr.bf16.mxu1 %v922_v49  ;;  %v923_v52 = vld [vmem:[#allocation2 + $0x10] sm:$0xff]  ;;  %v926_v53 = vld [vmem:[#allocation2 + $0x28] sm:$0xff]  ;;  %v925_v54 = vld [vmem:[#allocation2 + $0x20] sm:$0xff] }
 0x5f3   :  { %967 = vmatpush1.bf16.msra.mxu1 %v921_v50  ;;  %v928_v55 = vld [vmem:[#allocation2 + $0x38] sm:$0xff]  ;;  %v927_v56 = vld [vmem:[#allocation2 + $0x30] sm:$0xff]  ;;  %v930_v57 = vld [vmem:[#allocation2 + $0x48] sm:$0xff] }
 0x5f4   :  { %968 = vmatprep.subr.bf16.mxu1 %v924_v51  ;;  %v929_v58 = vld [vmem:[#allocation2 + $0x40] sm:$0xff]  ;;  %v932_v59 = vld [vmem:[#allocation2 + $0x58] sm:$0xff]  ;;  %v931_v60 = vld [vmem:[#allocation2 + $0x50] sm:$0xff] }
 0x5f5   :  { %v934_v61 = vld [vmem:[#allocation2 + $0x68] sm:$0xff]  ;;  %v933_v62 = vld [vmem:[#allocation2 + $0x60] sm:$0xff]  ;;  %v936_v63 = vld [vmem:[#allocation2 + $0x78] sm:$0xff] }
 0x5f6   :  { %v935_v0 = vld [vmem:[#allocation2 + $0x70] sm:$0xff]  ;;  %v938_v1 = vld [vmem:[#allocation2 + $0x88] sm:$0xff]  ;;  %v937_v2 = vld [vmem:[#allocation2 + $0x80] sm:$0xff] }
 0x5f7   :  { %969 = vmatpush1.bf16.msra.mxu1 %v923_v52  ;;  %v940_v3 = vld [vmem:[#allocation2 + $0x98] sm:$0xff]  ;;  %v939_v4 = vld [vmem:[#allocation2 + $0x90] sm:$0xff]  ;;  %v942_v5 = vld [vmem:[#allocation2 + $0xa8] sm:$0xff] }
 0x5f8   :  { %970 = vmatprep.subr.bf16.mxu1 %v926_v53  ;;  %v941_v6 = vld [vmem:[#allocation2 + $0xa0] sm:$0xff]  ;;  %v944_v7 = vld [vmem:[#allocation2 + $0xb8] sm:$0xff]  ;;  %v943_v8 = vld [vmem:[#allocation2 + $0xb0] sm:$0xff] }
 0x5f9   :  { %v946_v9 = vld [vmem:[#allocation2 + $0xc8] sm:$0xff]  ;;  %v945_v10 = vld [vmem:[#allocation2 + $0xc0] sm:$0xff]  ;;  %v948_v11 = vld [vmem:[#allocation2 + $0xd8] sm:$0xff] }
 0x5fa   :  { %v947_v12 = vld [vmem:[#allocation2 + $0xd0] sm:$0xff]  ;;  %v950_v13 = vld [vmem:[#allocation2 + $0xe8] sm:$0xff]  ;;  %v949_v14 = vld [vmem:[#allocation2 + $0xe0] sm:$0xff] }
 0x5fb   :  { %971 = vmatpush1.bf16.msra.mxu1 %v925_v54  ;;  %v952_v15 = vld [vmem:[#allocation2 + $0xf8] sm:$0xff]  ;;  %v951_v16 = vld [vmem:[#allocation2 + $0xf0] sm:$0xff]  ;;  %v1510_v18 = vld [vmem:[%s2022_s4 + $0x8] sm:$0x3] }
 0x5fc   :  { %972 = vmatprep.subr.bf16.mxu1 %v928_v55  ;;  %v959_v19 = vrot.slane %v1510_v18, %v1825_v38  ;;  %v963_v20 = vrot.slane %v1510_v18, %v1831_v40 }
 0x5ff   :  { %973 = vmatpush1.bf16.msra.mxu1 %v927_v56 }
 0x600   :  { %974 = vmatprep.subr.bf16.mxu1 %v930_v57 }
 0x603   :  { %975 = vmatpush1.bf16.msra.mxu1 %v929_v58 }
 0x604   :  { %976 = vmatprep.subr.bf16.mxu1 %v932_v59 }
 0x607   :  { %977 = vmatpush1.bf16.msra.mxu1 %v931_v60 }
 0x608   :  { %978 = vmatprep.subr.bf16.mxu1 %v934_v61 }
 0x60b   :  { %979 = vmatpush1.bf16.msra.mxu1 %v933_v62 }
 0x60c   :  { %980 = vmatprep.subr.bf16.mxu1 %v936_v63 }
 0x60f   :  { %981 = vmatpush1.bf16.msra.mxu1 %v935_v0 }
 0x610   :  { %982 = vmatprep.subr.bf16.mxu1 %v938_v1 }
 0x613   :  { %983 = vmatpush1.bf16.msra.mxu1 %v937_v2 }
 0x614   :  { %984 = vmatprep.subr.bf16.mxu1 %v940_v3 }
 0x617   :  { %985 = vmatpush1.bf16.msra.mxu1 %v939_v4 }
 0x618   :  { %986 = vmatprep.subr.bf16.mxu1 %v942_v5 }
 0x61b   :  { %987 = vmatpush1.bf16.msra.mxu1 %v941_v6 }
 0x61c   :  { %988 = vmatprep.subr.bf16.mxu1 %v944_v7 }
 0x61f   :  { %989 = vmatpush1.bf16.msra.mxu1 %v943_v8 }
 0x620   :  { %990 = vmatprep.subr.bf16.mxu1 %v946_v9 }
 0x623   :  { %991 = vmatpush1.bf16.msra.mxu1 %v945_v10 }
 0x624   :  { %992 = vmatprep.subr.bf16.mxu1 %v948_v11 }
 0x627   :  { %993 = vmatpush1.bf16.msra.mxu1 %v947_v12 }
 0x628   :  { %994 = vmatprep.subr.bf16.mxu1 %v950_v13 }
 0x62b   :  { %995 = vmatpush1.bf16.msra.mxu1 %v949_v14 }
 0x62c   :  { %996 = vmatprep.subr.bf16.mxu1 %v952_v15 }
 0x62f   :  { %997 = vmatpush1.bf16.msra.mxu1 %v951_v16 }
 0x632   :  { %999 = vmatmul.mubr.bf16.vlgmr.msra.gmra.mrb[8].mxu1 %v919_v17 }
 0x705   :  { %v1000_v21 = vpop.f32.mrb[8].mxu1 }
 0x706   :  { %v1967_v22 = vadd.f32 %v1000_v21, %v959_v19  ;;  %v1002_v23 = vpop.f32.mrb[9].mxu1 }
 0x707   :  { %v1003_v24 = vadd.f32 %v1002_v23, %v963_v20  ;;  %v1004_v25 = vpop.f32.mrb[10].mxu1 }
 0x708   :  { %v1007_v26 = vmax.f32 %v1967_v22, 0.0  ;;  %v1005_v27 = vpop.f32.mrb[11].mxu1 }
 0x709   :  { %v1008_v28 = vmax.f32 %v1003_v24, 0.0 }
 0x70a   :  { %1690 = dma.done.wait [#allocation4 + $0x1], 4096 }
 0x70b   :  { %1691 = vsyncadd [#allocation4 + $0x1], 4294963200  ;;  %v1012_v29 = vpack.c.bf16 %v1008_v28, %v1008_v28  ;;  %v1014_v30 = vld [vmem:[#allocation2 + $0x108] sm:$0xff]  ;;  %v1013_v31 = vld [vmem:[#allocation2 + $0x100] sm:$0xff]  ;;  %v1011_v1 = vpack.c.bf16 %v1007_v26, %v1007_v26 }
 0x70c   :  { %v1016_v32 = vld [vmem:[#allocation2 + $0x118] sm:$0xff]  ;;  %1058 = vmatprep.subr.bf16.mxu0 %v1014_v30  ;;  %v1015_v33 = vld [vmem:[#allocation2 + $0x110] sm:$0xff]  ;;  %v1018_v34 = vld [vmem:[#allocation2 + $0x128] sm:$0xff] }
 0x70d   :  { %1090 = vmatprep.mubr.bf16.mxu0 %v1012_v29  ;;  %1059 = vmatpush1.bf16.msra.mxu0 %v1013_v31  ;;  %v1017_v35 = vld [vmem:[#allocation2 + $0x120] sm:$0xff]  ;;  %v1020_v36 = vld [vmem:[#allocation2 + $0x138] sm:$0xff]  ;;  %v1019_v39 = vld [vmem:[#allocation2 + $0x130] sm:$0xff] }
 0x70e   :  { %1060 = vmatprep.subr.bf16.mxu0 %v1016_v32  ;;  %v1022_v41 = vld [vmem:[#allocation2 + $0x148] sm:$0xff]  ;;  %v1021_v42 = vld [vmem:[#allocation2 + $0x140] sm:$0xff]  ;;  %v1024_v43 = vld [vmem:[#allocation2 + $0x158] sm:$0xff] }
 0x70f   :  { %v1023_v44 = vld [vmem:[#allocation2 + $0x150] sm:$0xff]  ;;  %v1026_v45 = vld [vmem:[#allocation2 + $0x168] sm:$0xff]  ;;  %v1025_v46 = vld [vmem:[#allocation2 + $0x160] sm:$0xff] }
 0x710   :  { %v1028_v47 = vld [vmem:[#allocation2 + $0x178] sm:$0xff]  ;;  %v1027_v48 = vld [vmem:[#allocation2 + $0x170] sm:$0xff]  ;;  %v1030_v49 = vld [vmem:[#allocation2 + $0x188] sm:$0xff] }
 0x711   :  { %1061 = vmatpush1.bf16.msra.mxu0 %v1015_v33  ;;  %v1029_v50 = vld [vmem:[#allocation2 + $0x180] sm:$0xff]  ;;  %v1032_v51 = vld [vmem:[#allocation2 + $0x198] sm:$0xff]  ;;  %v1031_v52 = vld [vmem:[#allocation2 + $0x190] sm:$0xff] }
 0x712   :  { %1062 = vmatprep.subr.bf16.mxu0 %v1018_v34  ;;  %v1034_v53 = vld [vmem:[#allocation2 + $0x1a8] sm:$0xff]  ;;  %v1033_v54 = vld [vmem:[#allocation2 + $0x1a0] sm:$0xff]  ;;  %v1036_v55 = vld [vmem:[#allocation2 + $0x1b8] sm:$0xff] }
 0x713   :  { %v1035_v56 = vld [vmem:[#allocation2 + $0x1b0] sm:$0xff]  ;;  %v1038_v57 = vld [vmem:[#allocation2 + $0x1c8] sm:$0xff]  ;;  %v1037_v58 = vld [vmem:[#allocation2 + $0x1c0] sm:$0xff] }
 0x714   :  { %v1040_v59 = vld [vmem:[#allocation2 + $0x1d8] sm:$0xff]  ;;  %v1039_v60 = vld [vmem:[#allocation2 + $0x1d0] sm:$0xff]  ;;  %v1042_v61 = vld [vmem:[#allocation2 + $0x1e8] sm:$0xff] }
 0x715   :  { %1063 = vmatpush1.bf16.msra.mxu0 %v1017_v35  ;;  %v1041_v62 = vld [vmem:[#allocation2 + $0x1e0] sm:$0xff]  ;;  %v1044_v63 = vld [vmem:[#allocation2 + $0x1f8] sm:$0xff]  ;;  %v1043_v0 = vld [vmem:[#allocation2 + $0x1f0] sm:$0xff] }
 0x716   :  { %1064 = vmatprep.subr.bf16.mxu0 %v1020_v36  ;;  %v1511_v2 = vld [vmem:[%s2022_s4 + $0xa] sm:$0x3] }
 0x717   :  { %v1051_v3 = vrot.slane %v1511_v2, %v1825_v38  ;;  %v1055_v4 = vrot.slane %v1511_v2, %v1831_v40 }
 0x719   :  { %1065 = vmatpush1.bf16.msra.mxu0 %v1019_v39 }
 0x71a   :  { %1066 = vmatprep.subr.bf16.mxu0 %v1022_v41 }
 0x71d   :  { %1067 = vmatpush1.bf16.msra.mxu0 %v1021_v42 }
 0x71e   :  { %1068 = vmatprep.subr.bf16.mxu0 %v1024_v43 }
 0x721   :  { %1069 = vmatpush1.bf16.msra.mxu0 %v1023_v44 }
 0x722   :  { %1070 = vmatprep.subr.bf16.mxu0 %v1026_v45 }
 0x725   :  { %1071 = vmatpush1.bf16.msra.mxu0 %v1025_v46 }
 0x726   :  { %1072 = vmatprep.subr.bf16.mxu0 %v1028_v47 }
 0x729   :  { %1073 = vmatpush1.bf16.msra.mxu0 %v1027_v48 }
 0x72a   :  { %1074 = vmatprep.subr.bf16.mxu0 %v1030_v49 }
 0x72d   :  { %1075 = vmatpush1.bf16.msra.mxu0 %v1029_v50 }
 0x72e   :  { %1076 = vmatprep.subr.bf16.mxu0 %v1032_v51 }
 0x731   :  { %1077 = vmatpush1.bf16.msra.mxu0 %v1031_v52 }
 0x732   :  { %1078 = vmatprep.subr.bf16.mxu0 %v1034_v53 }
 0x735   :  { %1079 = vmatpush1.bf16.msra.mxu0 %v1033_v54 }
 0x736   :  { %1080 = vmatprep.subr.bf16.mxu0 %v1036_v55 }
 0x739   :  { %1081 = vmatpush1.bf16.msra.mxu0 %v1035_v56 }
 0x73a   :  { %1082 = vmatprep.subr.bf16.mxu0 %v1038_v57 }
 0x73d   :  { %1083 = vmatpush1.bf16.msra.mxu0 %v1037_v58 }
 0x73e   :  { %1084 = vmatprep.subr.bf16.mxu0 %v1040_v59 }
 0x741   :  { %1085 = vmatpush1.bf16.msra.mxu0 %v1039_v60 }
 0x742   :  { %1086 = vmatprep.subr.bf16.mxu0 %v1042_v61 }
 0x745   :  { %1087 = vmatpush1.bf16.msra.mxu0 %v1041_v62 }
 0x746   :  { %1088 = vmatprep.subr.bf16.mxu0 %v1044_v63 }
 0x749   :  { %1089 = vmatpush1.bf16.msra.mxu0 %v1043_v0 }
 0x74c   :  { %1091 = vmatmul.mubr.bf16.vlgmr.msra.gmra.mrb[12].mxu0 %v1011_v1 }
 0x81f   :  { %v1092_v5 = vpop.f32.mrb[12].mxu0 }
 0x820   :  { %v1978_v6 = vadd.f32 %v1092_v5, %v1051_v3  ;;  %v1094_v7 = vpop.f32.mrb[13].mxu0 }
 0x821   :  { %v1095_v8 = vadd.f32 %v1094_v7, %v1055_v4  ;;  %v1096_v9 = vpop.f32.mrb[14].mxu0 }
 0x822   :  { %v1099_v10 = vmax.f32 %v1978_v6, 0.0  ;;  %v1097_v11 = vpop.f32.mrb[15].mxu0 }
 0x823   :  { %v1100_v12 = vmax.f32 %v1095_v8, 0.0 }
 0x824   :  { %1692 = dma.done.wait [#allocation4 + $0x2], 14336 }
 0x825   :  { %1693 = vsyncadd [#allocation4 + $0x2], 4294952960  ;;  %v1981_v13 = vpack.c.bf16 %v1100_v12, %v1100_v12  ;;  %v1107_v14 = vld [vmem:[#allocation3 + $0x8] sm:$0xff]  ;;  %v1106_v15 = vld [vmem:[#allocation3] sm:$0xff] }
 0x826   :  { %v1114_v16 = vld [vmem:[#allocation3 + $0x40] sm:$0xff]  ;;  %1255 = vmatprep.subr.bf16.mxu1 %v1107_v14  ;;  %v1113_v17 = vld [vmem:[#allocation3 + $0x38] sm:$0xff]  ;;  %v1108_v20 = vld [vmem:[#allocation3 + $0x10] sm:$0xff] }
 0x827   :  { %1287 = vmatprep.mubr.bf16.mxu1 %v1981_v13  ;;  %1328 = vmatprep.mubr.bf16.mxu0 %v1981_v13  ;;  %v1121_v18 = vld [vmem:[#allocation3 + $0x78] sm:$0xff]  ;;  %v1116_v21 = vld [vmem:[#allocation3 + $0x50] sm:$0xff]  ;;  %v1115_v23 = vld [vmem:[#allocation3 + $0x48] sm:$0xff] }
 0x828   :  { %1256 = vmatpush1.bf16.msra.mxu1 %v1106_v15  ;;  %v1109_v19 = vld [vmem:[#allocation3 + $0x18] sm:$0xff]  ;;  %v1120_v22 = vld [vmem:[#allocation3 + $0x70] sm:$0xff]  ;;  %v1123_v25 = vld [vmem:[#allocation3 + $0x88] sm:$0xff] }
 0x829   :  { %1257 = vmatprep.subr.bf16.mxu1 %v1114_v16  ;;  %1296 = vmatprep.subr.bf16.mxu0 %v1109_v19  ;;  %v1128_v24 = vld [vmem:[#allocation3 + $0xb0] sm:$0xff]  ;;  %v1127_v26 = vld [vmem:[#allocation3 + $0xa8] sm:$0xff]  ;;  %v1122_v27 = vld [vmem:[#allocation3 + $0x80] sm:$0xff] }
 0x82a   :  { %1297 = vmatpush1.bf16.msra.mxu0 %v1108_v20  ;;  %v1135_v28 = vld [vmem:[#allocation3 + $0xe8] sm:$0xff]  ;;  %v1130_v29 = vld [vmem:[#allocation3 + $0xc0] sm:$0xff]  ;;  %v1129_v31 = vld [vmem:[#allocation3 + $0xb8] sm:$0xff]  ;;  %v1988_v20 = vpack.c.bf16 %v1099_v10, %v1099_v10 }
 0x82b   :  { %1298 = vmatprep.subr.bf16.mxu0 %v1116_v21  ;;  %v1134_v30 = vld [vmem:[#allocation3 + $0xe0] sm:$0xff]  ;;  %v1137_v33 = vld [vmem:[#allocation3 + $0xf8] sm:$0xff]  ;;  %v1136_v35 = vld [vmem:[#allocation3 + $0xf0] sm:$0xff] }
 0x82c   :  { %1258 = vmatpush1.bf16.msra.mxu1 %v1113_v17  ;;  %v1142_v32 = vld [vmem:[#allocation3 + $0x120] sm:$0xff]  ;;  %v1141_v34 = vld [vmem:[#allocation3 + $0x118] sm:$0xff]  ;;  %v1144_v39 = vld [vmem:[#allocation3 + $0x130] sm:$0xff] }
 0x82d   :  { %1259 = vmatprep.subr.bf16.mxu1 %v1121_v18  ;;  %v1149_v36 = vld [vmem:[#allocation3 + $0x158] sm:$0xff]  ;;  %v1148_v41 = vld [vmem:[#allocation3 + $0x150] sm:$0xff]  ;;  %v1143_v42 = vld [vmem:[#allocation3 + $0x128] sm:$0xff] }
 0x82e   :  { %1299 = vmatpush1.bf16.msra.mxu0 %v1115_v23  ;;  %v1156_v43 = vld [vmem:[#allocation3 + $0x190] sm:$0xff]  ;;  %v1151_v44 = vld [vmem:[#allocation3 + $0x168] sm:$0xff]  ;;  %v1150_v46 = vld [vmem:[#allocation3 + $0x160] sm:$0xff] }
 0x82f   :  { %1300 = vmatprep.subr.bf16.mxu0 %v1123_v25  ;;  %v1155_v45 = vld [vmem:[#allocation3 + $0x188] sm:$0xff]  ;;  %v1158_v48 = vld [vmem:[#allocation3 + $0x1a0] sm:$0xff]  ;;  %v1157_v50 = vld [vmem:[#allocation3 + $0x198] sm:$0xff] }
 0x830   :  { %1260 = vmatpush1.bf16.msra.mxu1 %v1120_v22  ;;  %v1163_v47 = vld [vmem:[#allocation3 + $0x1c8] sm:$0xff]  ;;  %v1162_v49 = vld [vmem:[#allocation3 + $0x1c0] sm:$0xff]  ;;  %v1165_v52 = vld [vmem:[#allocation3 + $0x1d8] sm:$0xff] }
 0x831   :  { %1261 = vmatprep.subr.bf16.mxu1 %v1128_v24  ;;  %v1170_v51 = vld [vmem:[#allocation3 + $0x200] sm:$0xff]  ;;  %v1169_v53 = vld [vmem:[#allocation3 + $0x1f8] sm:$0xff]  ;;  %v1164_v54 = vld [vmem:[#allocation3 + $0x1d0] sm:$0xff] }
 0x832   :  { %1301 = vmatpush1.bf16.msra.mxu0 %v1122_v27  ;;  %v1177_v55 = vld [vmem:[#allocation3 + $0x238] sm:$0xff]  ;;  %v1172_v56 = vld [vmem:[#allocation3 + $0x210] sm:$0xff]  ;;  %v1171_v58 = vld [vmem:[#allocation3 + $0x208] sm:$0xff] }
 0x833   :  { %1302 = vmatprep.subr.bf16.mxu0 %v1130_v29  ;;  %v1176_v57 = vld [vmem:[#allocation3 + $0x230] sm:$0xff]  ;;  %v1179_v60 = vld [vmem:[#allocation3 + $0x248] sm:$0xff]  ;;  %v1178_v62 = vld [vmem:[#allocation3 + $0x240] sm:$0xff] }
 0x834   :  { %1262 = vmatpush1.bf16.msra.mxu1 %v1127_v26  ;;  %v1184_v59 = vld [vmem:[#allocation3 + $0x270] sm:$0xff]  ;;  %v1183_v61 = vld [vmem:[#allocation3 + $0x268] sm:$0xff]  ;;  %v1186_v0 = vld [vmem:[#allocation3 + $0x280] sm:$0xff] }
 0x835   :  { %1263 = vmatprep.subr.bf16.mxu1 %v1135_v28  ;;  %v1191_v63 = vld [vmem:[#allocation3 + $0x2a8] sm:$0xff]  ;;  %v1190_v1 = vld [vmem:[#allocation3 + $0x2a0] sm:$0xff]  ;;  %v1185_v2 = vld [vmem:[#allocation3 + $0x278] sm:$0xff] }
 0x836   :  { %1303 = vmatpush1.bf16.msra.mxu0 %v1129_v31  ;;  %v1198_v3 = vld [vmem:[#allocation3 + $0x2e0] sm:$0xff]  ;;  %v1193_v4 = vld [vmem:[#allocation3 + $0x2b8] sm:$0xff]  ;;  %v1192_v7 = vld [vmem:[#allocation3 + $0x2b0] sm:$0xff] }
 0x837   :  { %1304 = vmatprep.subr.bf16.mxu0 %v1137_v33  ;;  %v1197_v5 = vld [vmem:[#allocation3 + $0x2d8] sm:$0xff]  ;;  %v1200_v9 = vld [vmem:[#allocation3 + $0x2f0] sm:$0xff]  ;;  %v1199_v12 = vld [vmem:[#allocation3 + $0x2e8] sm:$0xff] }
 0x838   :  { %1264 = vmatpush1.bf16.msra.mxu1 %v1134_v30  ;;  %v1205_v8 = vld [vmem:[#allocation3 + $0x318] sm:$0xff]  ;;  %v1204_v11 = vld [vmem:[#allocation3 + $0x310] sm:$0xff]  ;;  %v1207_v15 = vld [vmem:[#allocation3 + $0x328] sm:$0xff] }
 0x839   :  { %1265 = vmatprep.subr.bf16.mxu1 %v1142_v32  ;;  %v1212_v14 = vld [vmem:[#allocation3 + $0x350] sm:$0xff]  ;;  %v1211_v16 = vld [vmem:[#allocation3 + $0x348] sm:$0xff]  ;;  %v1206_v17 = vld [vmem:[#allocation3 + $0x320] sm:$0xff] }
 0x83a   :  { %1305 = vmatpush1.bf16.msra.mxu0 %v1136_v35  ;;  %v1111_v18 = vld [vmem:[#allocation3 + $0x28] sm:$0xff]  ;;  %v1214_v19 = vld [vmem:[#allocation3 + $0x360] sm:$0xff]  ;;  %v1213_v22 = vld [vmem:[#allocation3 + $0x358] sm:$0xff] }
 0x83b   :  { %1306 = vmatprep.subr.bf16.mxu0 %v1144_v39  ;;  %v1110_v21 = vld [vmem:[#allocation3 + $0x20] sm:$0xff]  ;;  %v1168_v24 = vld [vmem:[#allocation3 + $0x1f0] sm:$0xff]  ;;  %v1117_v25 = vld [vmem:[#allocation3 + $0x58] sm:$0xff] }
 0x83c   :  { %1266 = vmatpush1.bf16.msra.mxu1 %v1141_v34  ;;  %v1118_v23 = vld [vmem:[#allocation3 + $0x60] sm:$0xff]  ;;  %v1112_v26 = vld [vmem:[#allocation3 + $0x30] sm:$0xff]  ;;  %v1125_v6 = vld [vmem:[#allocation3 + $0x98] sm:$0xff] }
 0x83d   :  { %1267 = vmatprep.subr.bf16.mxu1 %v1149_v36  ;;  %v1175_v27 = vld [vmem:[#allocation3 + $0x228] sm:$0xff]  ;;  %v1124_v10 = vld [vmem:[#allocation3 + $0x90] sm:$0xff]  ;;  %v1182_v30 = vld [vmem:[#allocation3 + $0x260] sm:$0xff] }
 0x83e   :  { %1307 = vmatpush1.bf16.msra.mxu0 %v1143_v42  ;;  %v1119_v28 = vld [vmem:[#allocation3 + $0x68] sm:$0xff]  ;;  %v1132_v29 = vld [vmem:[#allocation3 + $0xd0] sm:$0xff]  ;;  %v1126_v32 = vld [vmem:[#allocation3 + $0xa0] sm:$0xff] }
 0x83f   :  { %1308 = vmatprep.subr.bf16.mxu0 %v1151_v44  ;;  %v1131_v31 = vld [vmem:[#allocation3 + $0xc8] sm:$0xff]  ;;  %v1189_v34 = vld [vmem:[#allocation3 + $0x298] sm:$0xff]  ;;  %v1138_v35 = vld [vmem:[#allocation3 + $0x100] sm:$0xff] }
 0x840   :  { %1268 = vmatpush1.bf16.msra.mxu1 %v1148_v41  ;;  %v1139_v33 = vld [vmem:[#allocation3 + $0x108] sm:$0xff]  ;;  %v1133_v36 = vld [vmem:[#allocation3 + $0xd8] sm:$0xff]  ;;  %v1146_v39 = vld [vmem:[#allocation3 + $0x140] sm:$0xff] }
 0x841   :  { %1269 = vmatprep.subr.bf16.mxu1 %v1156_v43  ;;  %v1196_v41 = vld [vmem:[#allocation3 + $0x2d0] sm:$0xff]  ;;  %v1153_v43 = vld [vmem:[#allocation3 + $0x178] sm:$0xff]  ;;  %v1203_v44 = vld [vmem:[#allocation3 + $0x308] sm:$0xff] }
 0x842   :  { %1309 = vmatpush1.bf16.msra.mxu0 %v1150_v46  ;;  %v1140_v42 = vld [vmem:[#allocation3 + $0x110] sm:$0xff]  ;;  %v1147_v46 = vld [vmem:[#allocation3 + $0x148] sm:$0xff] }
 0x843   :  { %1310 = vmatprep.subr.bf16.mxu0 %v1158_v48  ;;  %v1210_v48 = vld [vmem:[#allocation3 + $0x340] sm:$0xff] }
 0x844   :  { %1270 = vmatpush1.bf16.msra.mxu1 %v1155_v45  ;;  %v1152_v45 = vld [vmem:[#allocation3 + $0x170] sm:$0xff] }
 0x845   :  { %1271 = vmatprep.subr.bf16.mxu1 %v1163_v47  ;;  %v1160_v47 = vld [vmem:[#allocation3 + $0x1b0] sm:$0xff] }
 0x846   :  { %1311 = vmatpush1.bf16.msra.mxu0 %v1157_v50  ;;  %v1154_v50 = vld [vmem:[#allocation3 + $0x180] sm:$0xff] }
 0x847   :  { %1312 = vmatprep.subr.bf16.mxu0 %v1165_v52  ;;  %v1217_v52 = vld [vmem:[#allocation3 + $0x378] sm:$0xff] }
 0x848   :  { %1272 = vmatpush1.bf16.msra.mxu1 %v1162_v49  ;;  %v1159_v49 = vld [vmem:[#allocation3 + $0x1a8] sm:$0xff] }
 0x849   :  { %1273 = vmatprep.subr.bf16.mxu1 %v1170_v51  ;;  %v1167_v51 = vld [vmem:[#allocation3 + $0x1e8] sm:$0xff] }
 0x84a   :  { %1313 = vmatpush1.bf16.msra.mxu0 %v1164_v54  ;;  %v1161_v54 = vld [vmem:[#allocation3 + $0x1b8] sm:$0xff] }
 0x84b   :  { %1314 = vmatprep.subr.bf16.mxu0 %v1172_v56  ;;  %v1173_v56 = vld [vmem:[#allocation3 + $0x218] sm:$0xff] }
 0x84c   :  { %1274 = vmatpush1.bf16.msra.mxu1 %v1169_v53  ;;  %v1166_v53 = vld [vmem:[#allocation3 + $0x1e0] sm:$0xff] }
 0x84d   :  { %1275 = vmatprep.subr.bf16.mxu1 %v1177_v55  ;;  %v1174_v55 = vld [vmem:[#allocation3 + $0x220] sm:$0xff] }
 0x84e   :  { %1315 = vmatpush1.bf16.msra.mxu0 %v1171_v58  ;;  %v1180_v58 = vld [vmem:[#allocation3 + $0x250] sm:$0xff] }
 0x84f   :  { %1316 = vmatprep.subr.bf16.mxu0 %v1179_v60  ;;  %v1187_v60 = vld [vmem:[#allocation3 + $0x288] sm:$0xff] }
 0x850   :  { %1276 = vmatpush1.bf16.msra.mxu1 %v1176_v57  ;;  %v1181_v57 = vld [vmem:[#allocation3 + $0x258] sm:$0xff] }
 0x851   :  { %1277 = vmatprep.subr.bf16.mxu1 %v1184_v59  ;;  %v1188_v59 = vld [vmem:[#allocation3 + $0x290] sm:$0xff] }
 0x852   :  { %1317 = vmatpush1.bf16.msra.mxu0 %v1178_v62  ;;  %v1194_v62 = vld [vmem:[#allocation3 + $0x2c0] sm:$0xff] }
 0x853   :  { %1318 = vmatprep.subr.bf16.mxu0 %v1186_v0  ;;  %v1201_v0 = vld [vmem:[#allocation3 + $0x2f8] sm:$0xff] }
 0x854   :  { %1278 = vmatpush1.bf16.msra.mxu1 %v1183_v61  ;;  %v1195_v61 = vld [vmem:[#allocation3 + $0x2c8] sm:$0xff] }
 0x855   :  { %1279 = vmatprep.subr.bf16.mxu1 %v1191_v63  ;;  %v1202_v63 = vld [vmem:[#allocation3 + $0x300] sm:$0xff] }
 0x856   :  { %1319 = vmatpush1.bf16.msra.mxu0 %v1185_v2  ;;  %v1208_v2 = vld [vmem:[#allocation3 + $0x330] sm:$0xff] }
 0x857   :  { %1320 = vmatprep.subr.bf16.mxu0 %v1193_v4  ;;  %v1215_v4 = vld [vmem:[#allocation3 + $0x368] sm:$0xff] }
 0x858   :  { %1280 = vmatpush1.bf16.msra.mxu1 %v1190_v1  ;;  %v1209_v1 = vld [vmem:[#allocation3 + $0x338] sm:$0xff] }
 0x859   :  { %1281 = vmatprep.subr.bf16.mxu1 %v1198_v3  ;;  %v1216_v3 = vld [vmem:[#allocation3 + $0x370] sm:$0xff] }
 0x85a   :  { %1321 = vmatpush1.bf16.msra.mxu0 %v1192_v7 }
 0x85b   :  { %1322 = vmatprep.subr.bf16.mxu0 %v1200_v9 }
 0x85c   :  { %1282 = vmatpush1.bf16.msra.mxu1 %v1197_v5  ;;  %v1218_v5 = vld [vmem:[%s2024_s6] sm:$0xff]  ;;  %s1720_s6 = smov [#allocation10]  }
 0x85d   :  { %1283 = vmatprep.subr.bf16.mxu1 %v1205_v8  ;;  %v1223_v7 = vrot.slane %v1218_v5, %v1825_v38  ;;  %v1230_v8 = vsub.s32 2, %v1822_v37  ;;  %v1227_v9 = vrot.slane %v1218_v5, %v1831_v40  ;;  %v1246_v40 = vsub.s32 6, %v1822_v37  ;;  %s1431_s12 = sshll.u32 %s1720_s6, 4  ;;  %s1432_s12 = int_to_ptr.vmem [resolvable:$true] %s1431_s12 }
 0x85e   :  { %1323 = vmatpush1.bf16.msra.mxu0 %v1199_v12  ;;  %s1654_s25 = scalar_lea.vmem %s1432_s12, 896  ;;  %p1659_p3 = scmp.lt.s32.totalorder %s1432_s12, %s1432_s12 }
 0x85f   :  { %1324 = vmatprep.subr.bf16.mxu0 %v1207_v15  ;;  %p1655_p2 = scmp.ne.s32.totalorder %s1432_s12, %s1654_s25  ;;  %p1660_p4 = scmp.lt.s32.totalorder %s1654_s25, %s1654_s25 }
 0x860   :  { %1284 = vmatpush1.bf16.msra.mxu1 %v1204_v11  ;;  %v1234_v11 = vsub.s32 3, %v1822_v37 }
 0x861   :  { %1285 = vmatprep.subr.bf16.mxu1 %v1212_v14  ;;  %p1661_p5 = por %p1660_p4, %p1659_p3 }
 0x862   :  { %1325 = vmatpush1.bf16.msra.mxu0 %v1206_v17 }
 0x863   :  { %1326 = vmatprep.subr.bf16.mxu0 %v1214_v19  ;;  %v1235_v19 = vrot.slane %v1218_v5, %v1234_v11  ;;  %p1662_p6 = pnand %p1661_p5, %p1655_p2 }
 0x864   :  { %1286 = vmatpush1.bf16.msra.mxu1 %v1211_v16  ;;  %v1231_v16 = vrot.slane %v1218_v5, %v1230_v8 }
 0x865   :  { %1337 = vmatprep.subr.bf16.mxu1 %v1111_v18 }
 0x866   :  { %1327 = vmatpush1.bf16.msra.mxu0 %v1213_v22 }
 0x867   :  { %1288 = vmatmul.mubr.bf16.vlgmr.msra.gmra.mrb[12].mxu1 %v1988_v20  ;;  %1515 = vmatprep.subr.bf16.mxu0 %v1168_v24 }
 0x868   :  { %1338 = vmatpush1.bf16.msra.mxu1 %v1110_v21  ;;  %1369 = vmatprep.mubr.bf16.mxu1 %v1981_v13 }
 0x869   :  { %1339 = vmatprep.subr.bf16.mxu1 %v1118_v23  ;;  %1329 = vmatmul.mubr.bf16.vlgmr.msra.gmra.mrb[16].mxu0 %v1988_v20 }
 0x86a   :  { %1516 = vmatpush3.bf16.msra.mxu0 %v1112_v26  ;;  %1410 = vmatprep.mubr.bf16.mxu0 %v1981_v13  ;;  %v1145_v13 = vld [vmem:[#allocation3 + $0x138] sm:$0xff] }
 0x86b   :  { %1517 = vmatprep.subr.bf16.mxu0 %v1175_v27 }
 0x86c   :  { %1340 = vmatpush1.bf16.msra.mxu1 %v1117_v25 }
 0x86d   :  { %1341 = vmatprep.subr.bf16.mxu1 %v1125_v6  ;;  %v1247_v6 = vrot.slane %v1218_v5, %v1246_v40 }
 0x86e   :  { %1518 = vmatpush3.bf16.msra.mxu0 %v1119_v28 }
 0x86f   :  { %1519 = vmatprep.subr.bf16.mxu0 %v1182_v30 }
 0x870   :  { %1342 = vmatpush1.bf16.msra.mxu1 %v1124_v10 }
 0x871   :  { %1343 = vmatprep.subr.bf16.mxu1 %v1132_v29 }
 0x872   :  { %1520 = vmatpush3.bf16.msra.mxu0 %v1126_v32  ;;  %v1242_v32 = vsub.s32 5, %v1822_v37 }
 0x873   :  { %1521 = vmatprep.subr.bf16.mxu0 %v1189_v34 }
 0x874   :  { %1344 = vmatpush1.bf16.msra.mxu1 %v1131_v31  ;;  %v1238_v31 = vsub.s32 4, %v1822_v37  ;;  %v1243_v34 = vrot.slane %v1218_v5, %v1242_v32 }
 0x875   :  { %1345 = vmatprep.subr.bf16.mxu1 %v1139_v33 }
 0x876   :  { %1522 = vmatpush3.bf16.msra.mxu0 %v1133_v36  ;;  %v1239_v33 = vrot.slane %v1218_v5, %v1238_v31 }
 0x877   :  { %1523 = vmatprep.subr.bf16.mxu0 %v1196_v41 }
 0x878   :  { %1346 = vmatpush1.bf16.msra.mxu1 %v1138_v35 }
 0x879   :  { %1347 = vmatprep.subr.bf16.mxu1 %v1146_v39 }
 0x87a   :  { %1524 = vmatpush3.bf16.msra.mxu0 %v1140_v42 }
 0x87b   :  { %1525 = vmatprep.subr.bf16.mxu0 %v1203_v44 }
 0x87c   :  { %1348 = vmatpush1.bf16.msra.mxu1 %v1145_v13 }
 0x87d   :  { %1349 = vmatprep.subr.bf16.mxu1 %v1153_v43 }
 0x87e   :  { %1526 = vmatpush3.bf16.msra.mxu0 %v1147_v46 }
 0x87f   :  { %1527 = vmatprep.subr.bf16.mxu0 %v1210_v48 }
 0x880   :  { %1350 = vmatpush1.bf16.msra.mxu1 %v1152_v45 }
 0x881   :  { %1351 = vmatprep.subr.bf16.mxu1 %v1160_v47 }
 0x882   :  { %1528 = vmatpush3.bf16.msra.mxu0 %v1154_v50 }
 0x883   :  { %1529 = vmatprep.subr.bf16.mxu0 %v1217_v52 }
 0x884   :  { %1352 = vmatpush1.bf16.msra.mxu1 %v1159_v49 }
 0x885   :  { %1353 = vmatprep.subr.bf16.mxu1 %v1167_v51 }
 0x886   :  { %1530 = vmatpush3.bf16.msra.mxu0 %v1161_v54 }
 0x888   :  { %1354 = vmatpush1.bf16.msra.mxu1 %v1166_v53 }
 0x889   :  { %1355 = vmatprep.subr.bf16.mxu1 %v1174_v55  ;;  %1411 = vmatmul.mubr.bf16.vlgmr.msra.gmra.mrb[20].mxu0 %v1988_v20 }
 0x88c   :  { %1356 = vmatpush1.bf16.msra.mxu1 %v1173_v56 }
 0x88d   :  { %1357 = vmatprep.subr.bf16.mxu1 %v1181_v57 }
 0x890   :  { %1358 = vmatpush1.bf16.msra.mxu1 %v1180_v58 }
 0x891   :  { %1359 = vmatprep.subr.bf16.mxu1 %v1188_v59 }
 0x894   :  { %1360 = vmatpush1.bf16.msra.mxu1 %v1187_v60 }
 0x895   :  { %1361 = vmatprep.subr.bf16.mxu1 %v1195_v61 }
 0x898   :  { %1362 = vmatpush1.bf16.msra.mxu1 %v1194_v62 }
 0x899   :  { %1363 = vmatprep.subr.bf16.mxu1 %v1202_v63 }
 0x89c   :  { %1364 = vmatpush1.bf16.msra.mxu1 %v1201_v0 }
 0x89d   :  { %1365 = vmatprep.subr.bf16.mxu1 %v1209_v1 }
 0x8a0   :  { %1366 = vmatpush1.bf16.msra.mxu1 %v1208_v2 }
 0x8a1   :  { %1367 = vmatprep.subr.bf16.mxu1 %v1216_v3 }
 0x8a4   :  { %1368 = vmatpush1.bf16.msra.mxu1 %v1215_v4 }
 0x8a7   :  { %1370 = vmatmul.mubr.bf16.vlgmr.msra.gmra.mrb[16].mxu1 %v1988_v20 }
 0x93a   :  { %v1289_v12 = vpop.f32.mrb[12].mxu1 }
 0x93b   :  { %v1290_v14 = vadd.f32 %v1289_v12, %v1223_v7  ;;  %v1291_v15 = vpop.f32.mrb[13].mxu1 }
 0x93c   :  { %v1292_v17 = vadd.f32 %v1291_v15, %v1227_v9  ;;  %v1293_v18 = vpop.f32.mrb[14].mxu1  ;;  %v1330_v21 = vpop.f32.mrb[16].mxu0 }
 0x93d   :  { %1418 = vst [vmem:[#allocation10] sm:$0xff] %v1290_v14  ;;  %v1294_v20 = vpop.f32.mrb[15].mxu1  ;;  %v1331_v22 = vadd.f32 %v1330_v21, %v1231_v16  ;;  %v1332_v23 = vpop.f32.mrb[17].mxu0 }
 0x93e   :  { %1419 = vst [vmem:[#allocation10 + $0x8] sm:$0xff] %v1292_v17  ;;  %v1333_v38 = vadd.f32 %v1332_v23, %v1235_v19  ;;  %v1334_v24 = vpop.f32.mrb[18].mxu0 }
 0x93f   :  { %1420 = vst [vmem:[#allocation10 + $0x10] sm:$0xff] %v1331_v22  ;;  %v1335_v25 = vpop.f32.mrb[19].mxu0 }
 0x940   :  { %1421 = vst [vmem:[#allocation10 + $0x18] sm:$0xff] %v1333_v38 }
 0x95c   :  { %v1531_v26 = vpop.f32.mrb[20].mxu0 }
 0x95d   :  { %v1532_v27 = vpop.f32.mrb[21].mxu0 }
 0x95e   :  { %v1533_v10 = vadd.f32 %v1532_v27, %v1531_v26  ;;  %v1534_v28 = vpop.f32.mrb[22].mxu0 }
 0x95f   :  { %v1535_v29 = vpop.f32.mrb[23].mxu0 }
 0x960   :  { %v1413_v30 = vadd.f32 %v1533_v10, %v1247_v6 }
 0x962   :  { %1424 = vst [vmem:[#allocation10 + $0x30] sm:$0xff] %v1413_v30 }
 0x97a   :  { %v1371_v35 = vpop.f32.mrb[16].mxu1 }
 0x97b   :  { %v1372_v36 = vadd.f32 %v1371_v35, %v1239_v33  ;;  %v1373_v39 = vpop.f32.mrb[17].mxu1 }
 0x97c   :  { %v1374_v41 = vadd.f32 %v1373_v39, %v1243_v34  ;;  %v1375_v13 = vpop.f32.mrb[18].mxu1 }
 0x97d   :  { %1422 = vst [vmem:[#allocation10 + $0x20] sm:$0xff] %v1372_v36  ;;  %v1376_v42 = vpop.f32.mrb[19].mxu1 }
 0x97e   :  { %1423 = vst [vmem:[#allocation10 + $0x28] sm:$0xff] %v1374_v41 }
 0x97f   :  { %1665 = shalt.err (!%p1662_p6)
}
 0x980   :  { %s1666_s16 = scalar_lea.hbm %s2025_s7, 896 }
 0x981   :  { %p1667_p7 = scmp.ne.s32.totalorder %s2025_s7, %s1666_s16  ;;  %p1670_p8 = scmp.lt.u32.totalorder %s1666_s16, %s2025_s7 }
 0x983   :  { %p1672_p9 = pnand %p1670_p8, %p1667_p7 }
 0x985   :  { %1675 = shalt.err (!%p1672_p9)
}
 0x986   :  { %1434 = dma.vmem_to_hbm [thread:$0]  %s1432_s12, 896, %s2025_s7, [#allocation7]  }
 0x987   :  { %1694 = dma.done.wait [#allocation7], 896  }
 0x988   :  { %1695 = vsyncadd [#allocation7], 4294966400 }
 0x989   :  { %1438 = vsyncpa [#allocation6], 1 }
 0x98a   :  { %1439 = vsyncpa [#allocation9], 1 }
 0x98b   :  { %1440 = vsyncpa [#allocation7], 1 }
 0x98c   :  { %1441 = vsyncmov [#allocation4] }
 0x98f   :  { %s1442_s2 = vpop.sfrf %1441 }
 0x990   :  { %p1512_p10 = scmp.ne.s32.totalorder %s1442_s2, 0 }
 0x992   :  { %1446 = shalt.err (%p1512_p10)  }
 0x993   :  { %1448 = vsyncmov [#allocation4 + $0x1] }
 0x996   :  { %s1449_s26 = vpop.sfrf %1448 }
 0x997   :  { %p1513_p11 = scmp.ne.s32.totalorder %s1449_s26, 0 }
 0x999   :  { %1453 = shalt.err (%p1513_p11)  }
 0x99a   :  { %1455 = vsyncmov [#allocation4 + $0x2] }
 0x99d   :  { %s1456_s28 = vpop.sfrf %1455 }
 0x99e   :  { %p1514_p12 = scmp.ne.s32.totalorder %s1456_s28, 0 }
 0x9a0   :  { %1460 = shalt.err (%p1514_p12)  }

</bundles_post_ra>
